<compile_context>
chip_gen: v5e
topology: v5e:2x2
jax: 0.10.0
libtpu: 0.0.40
codegen_flags: <defaults>
</compile_context>

<pallas_src>
import functools

import jax
import jax.numpy as jnp
from jax.experimental import pallas as pl
from jax.experimental.pallas import tpu as pltpu

LAYER_NORM_EPS = 1e-12
_VMEM_LIMIT_BYTES = 32 * 1024 * 1024          # safe on v5e/v6e/v7x
_SINGLE_SHOT_VMEM_BUDGET = 20 * 1024 * 1024   # headroom under the scoped limit


def _round_up(x, m):
    return ((x + m - 1) // m) * m


def _ln_finalize(h, g, bt, eps, out_dtype):
    """LayerNorm(+affine) of an f32 tile; returns out_dtype."""
    mu = jnp.mean(h, axis=-1, keepdims=True)
    var = jnp.mean(jnp.square(h - mu), axis=-1, keepdims=True)
    normed = (h - mu) * jax.lax.rsqrt(var + eps)
    return (normed * g.astype(jnp.float32) + bt.astype(jnp.float32)).astype(out_dtype)


# ----------------------- path A: single-shot kernel ------------------------
def _bert_output_fused_kernel(x_ref, w_ref, b_ref, r_ref, g_ref, bt_ref, o_ref,
                              *, eps):
    h = jnp.dot(
        x_ref[...].astype(jnp.bfloat16),
        w_ref[...].astype(jnp.bfloat16),
        preferred_element_type=jnp.float32,
    )
    h = h + b_ref[...].astype(jnp.float32) + r_ref[...].astype(jnp.float32)
    o_ref[...] = _ln_finalize(h, g_ref[...], bt_ref[...], eps, o_ref.dtype)


# ------------------------ path B: K-split kernel ---------------------------
def _bert_output_ksplit_kernel(x_ref, w_ref, b_ref, r_ref, g_ref, bt_ref, o_ref,
                               acc_ref, *, eps):
    k = pl.program_id(1)
    prod = jnp.dot(
        x_ref[...].astype(jnp.bfloat16),
        w_ref[...].astype(jnp.bfloat16),
        preferred_element_type=jnp.float32,
    )

    @pl.when(k == 0)
    def _():
        acc_ref[...] = prod          # first step writes (no zero-fill pass)

    @pl.when(k > 0)
    def _():
        acc_ref[...] += prod

    @pl.when(k == pl.num_programs(1) - 1)
    def _():
        h = (acc_ref[...]
             + b_ref[...].astype(jnp.float32)
             + r_ref[...].astype(jnp.float32))
        o_ref[...] = _ln_finalize(h, g_ref[...], bt_ref[...], eps, o_ref.dtype)


# ------------------------------- wrapper -----------------------------------
def bert_output(hidden_states, input_tensor, w, b, gamma, beta,
                *, eps=LAYER_NORM_EPS, block_m=256, block_k=512,
                max_single_shot_vmem=_SINGLE_SHOT_VMEM_BUDGET):
    """Fused BertOutput forward.

    hidden_states: [..., intermediate]  (output of BertIntermediate)
    input_tensor : [..., hidden]        (residual)
    w            : [intermediate, hidden]  (torch weight transposed)
    b, gamma, beta: [hidden]
    """
    kdim, hdim = w.shape
    out_shape = input_tensor.shape

    x2d = hidden_states.reshape(-1, kdim)
    r2d = input_tensor.reshape(-1, hdim)
    n = x2d.shape[0]

    # Row tiling (parallel axis): pad rows so tm | n_pad.
    tm = min(block_m, _round_up(n, 8))
    n_pad = _round_up(n, tm)
    if n_pad != n:
        x2d = jnp.pad(x2d, ((0, n_pad - n), (0, 0)))
        r2d = jnp.pad(r2d, ((0, n_pad - n), (0, 0)))

    b2 = b.reshape(1, hdim)
    g2 = gamma.reshape(1, hdim)
    bt2 = beta.reshape(1, hdim)
    out_dtype = input_tensor.dtype

    # Double-buffered VMEM footprint estimate for the single-shot path.
    single_vmem = 2 * (
        tm * kdim * x2d.dtype.itemsize
        + kdim * hdim * w.dtype.itemsize
        + tm * hdim * (r2d.dtype.itemsize + jnp.dtype(out_dtype).itemsize)
    )

    compiler_params_1d = pltpu.CompilerParams(
        dimension_semantics=("parallel",),
        vmem_limit_bytes=_VMEM_LIMIT_BYTES,
    )
    compiler_params_2d = pltpu.CompilerParams(
        dimension_semantics=("parallel", "arbitrary"),
        vmem_limit_bytes=_VMEM_LIMIT_BYTES,
    )

    if single_vmem <= max_single_shot_vmem:
        # ---- Path A: single-shot, weight resident across row blocks. ----
        out2d = pl.pallas_call(
            functools.partial(_bert_output_fused_kernel, eps=eps),
            out_shape=jax.ShapeDtypeStruct((n_pad, hdim), out_dtype),
            grid_spec=pltpu.PrefetchScalarGridSpec(
                num_scalar_prefetch=0,
                grid=(n_pad // tm,),
                in_specs=[
                    pl.BlockSpec((tm, kdim), lambda i: (i, 0)),    # x
                    pl.BlockSpec((kdim, hdim), lambda i: (0, 0)),  # weight (resident)
                    pl.BlockSpec((1, hdim), lambda i: (0, 0)),     # bias
                    pl.BlockSpec((tm, hdim), lambda i: (i, 0)),    # residual
                    pl.BlockSpec((1, hdim), lambda i: (0, 0)),     # ln gamma
                    pl.BlockSpec((1, hdim), lambda i: (0, 0)),     # ln beta
                ],
                out_specs=pl.BlockSpec((tm, hdim), lambda i: (i, 0)),
            ),
            compiler_params=compiler_params_1d,
        )(x2d, w, b2, r2d, g2, bt2)
    else:
        # ---- Path B: K-split accumulation. ----
        # Zero-padding the contraction dim does not change the matmul result.
        tk = min(block_k, _round_up(kdim, 128))
        k_pad = _round_up(kdim, tk)
        if k_pad != kdim:
            x2d = jnp.pad(x2d, ((0, 0), (0, k_pad - kdim)))
            w = jnp.pad(w, ((0, k_pad - kdim), (0, 0)))

        out2d = pl.pallas_call(
            functools.partial(_bert_output_ksplit_kernel, eps=eps),
            out_shape=jax.ShapeDtypeStruct((n_pad, hdim), out_dtype),
            grid_spec=pltpu.PrefetchScalarGridSpec(
                num_scalar_prefetch=0,
                grid=(n_pad // tm, k_pad // tk),
                in_specs=[
                    pl.BlockSpec((tm, tk), lambda i, k: (i, k)),    # x
                    pl.BlockSpec((tk, hdim), lambda i, k: (k, 0)),  # weight
                    pl.BlockSpec((1, hdim), lambda i, k: (0, 0)),   # bias
                    pl.BlockSpec((tm, hdim), lambda i, k: (i, 0)),  # residual
                    pl.BlockSpec((1, hdim), lambda i, k: (0, 0)),   # ln gamma
                    pl.BlockSpec((1, hdim), lambda i, k: (0, 0)),   # ln beta
                ],
                out_specs=pl.BlockSpec((tm, hdim), lambda i, k: (i, 0)),
                scratch_shapes=[pltpu.VMEM((tm, hdim), jnp.float32)],
            ),
            compiler_params=compiler_params_2d,
        )(x2d, w, b2, r2d, g2, bt2)

    return out2d[:n].reshape(out_shape)


# ------------------------------ reference ----------------------------------
def _reference(hidden_states, input_tensor, w, b, gamma, beta, eps=LAYER_NORM_EPS):
    h = hidden_states.astype(jnp.float32) @ w.astype(jnp.float32) + b
    h = h + input_tensor.astype(jnp.float32)
    mu = jnp.mean(h, axis=-1, keepdims=True)
    var = jnp.mean(jnp.square(h - mu), axis=-1, keepdims=True)
    return (h - mu) * jax.lax.rsqrt(var + eps) * gamma + beta


# --------------------------------- main -------------------------------------
if __name__ == "__main__":
    B, S = 2, 256                      # 512 rows -> 2 parallel row blocks (both TCs)
    HIDDEN, INTERMEDIATE = 128, 512    # lane-dense (multiples of 128)

    key = jax.random.PRNGKey(0)
    k_x, k_r, k_w, k_b, k_beta = jax.random.split(key, 5)

    hidden_states = jax.random.normal(k_x, (B, S, INTERMEDIATE), jnp.float32)
    input_tensor = jax.random.normal(k_r, (B, S, HIDDEN), jnp.float32)
    w = 0.02 * jax.random.normal(k_w, (INTERMEDIATE, HIDDEN), jnp.float32)
    b = 0.02 * jax.random.normal(k_b, (HIDDEN,), jnp.float32)
    gamma = jnp.ones((HIDDEN,), jnp.float32)
    beta = 0.02 * jax.random.normal(k_beta, (HIDDEN,), jnp.float32)

    fused = jax.jit(
        bert_output,
        static_argnames=("eps", "block_m", "block_k", "max_single_shot_vmem"),
    )
    ref = _reference(hidden_states, input_tensor, w, b, gamma, beta)

    # Path A: single-shot fused matmul + LayerNorm (weight resident in VMEM).
    out_a = jax.block_until_ready(
        fused(hidden_states, input_tensor, w, b, gamma, beta))
    assert out_a.shape == (B, S, HIDDEN), out_a.shape
    err_a = float(jnp.max(jnp.abs(out_a - ref)))
    # bf16 MXU operands / f32 accumulate: small, bounded mismatch vs f32 ref.
    assert err_a < 5e-2, err_a

    # Path B: K-split accumulation (forced by zeroing the single-shot budget).
    out_b = jax.block_until_ready(
        fused(hidden_states, input_tensor, w, b, gamma, beta,
              block_k=256, max_single_shot_vmem=0))
    err_b = float(jnp.max(jnp.abs(out_b - ref)))
    assert err_b < 5e-2, err_b

    print("KERNEL_OK")
</pallas_src>

<mosaic_0001>
module attributes {stable_mosaic.version = 11 : i64} {
  func.func @_bert_output_fused_kernel(%arg0: i32, %arg1: memref<256x512xf32, #tpu.memory_space<vmem>>, %arg2: memref<512x128xf32, #tpu.memory_space<vmem>>, %arg3: memref<1x128xf32, #tpu.memory_space<vmem>>, %arg4: memref<256x128xf32, #tpu.memory_space<vmem>>, %arg5: memref<1x128xf32, #tpu.memory_space<vmem>>, %arg6: memref<1x128xf32, #tpu.memory_space<vmem>>, %arg7: memref<256x128xf32, #tpu.memory_space<vmem>>) attributes {dimension_semantics = [#tpu.dimension_semantics<parallel>], iteration_bounds = array<i64: 2>, scalar_prefetch = 0 : i64, scratch_operands = 0 : i64, tpu.core_type = #tpu.core_type<tc>, window_params = [{transform_indices = @transform_0, window_bounds = array<i64: 256, 512>}, {pipeline_mode = #tpu.pipeline_mode<synchronous>, transform_indices = @transform_1, window_bounds = array<i64: 512, 128>}, {pipeline_mode = #tpu.pipeline_mode<synchronous>, transform_indices = @transform_2, window_bounds = array<i64: 1, 128>}, {transform_indices = @transform_3, window_bounds = array<i64: 256, 128>}, {pipeline_mode = #tpu.pipeline_mode<synchronous>, transform_indices = @transform_4, window_bounds = array<i64: 1, 128>}, {pipeline_mode = #tpu.pipeline_mode<synchronous>, transform_indices = @transform_5, window_bounds = array<i64: 1, 128>}, {transform_indices = @transform_6, window_bounds = array<i64: 256, 128>}]} {
    %c0 = arith.constant 0 : index
    %c0_0 = arith.constant 0 : index
    %0 = vector.load %arg1[%c0, %c0_0] : memref<256x512xf32, #tpu.memory_space<vmem>>, vector<256x512xf32>
    %1 = arith.truncf %0 : vector<256x512xf32> to vector<256x512xbf16>
    %c0_1 = arith.constant 0 : index
    %c0_2 = arith.constant 0 : index
    %2 = vector.load %arg2[%c0_1, %c0_2] : memref<512x128xf32, #tpu.memory_space<vmem>>, vector<512x128xf32>
    %3 = arith.truncf %2 : vector<512x128xf32> to vector<512x128xbf16>
    %cst = arith.constant dense<0.000000e+00> : vector<256x128xf32>
    %4 = tpu.matmul %1, %3, %cst {dimension_numbers = #tpu.dot_dimension_numbers<[1], [0], [0], [1], [0, 0, 1, 1], [], []>} : vector<256x512xbf16>, vector<512x128xbf16>, vector<256x128xf32> -> vector<256x128xf32>
    %c0_3 = arith.constant 0 : index
    %c0_4 = arith.constant 0 : index
    %5 = vector.load %arg3[%c0_3, %c0_4] : memref<1x128xf32, #tpu.memory_space<vmem>>, vector<1x128xf32>
    %6 = vector.broadcast %5 : vector<1x128xf32> to vector<256x128xf32>
    %7 = arith.addf %4, %6 : vector<256x128xf32>
    %c0_5 = arith.constant 0 : index
    %c0_6 = arith.constant 0 : index
    %8 = vector.load %arg4[%c0_5, %c0_6] : memref<256x128xf32, #tpu.memory_space<vmem>>, vector<256x128xf32>
    %9 = arith.addf %7, %8 : vector<256x128xf32>
    %c0_7 = arith.constant 0 : index
    %c0_8 = arith.constant 0 : index
    %10 = vector.load %arg5[%c0_7, %c0_8] : memref<1x128xf32, #tpu.memory_space<vmem>>, vector<1x128xf32>
    %c0_9 = arith.constant 0 : index
    %c0_10 = arith.constant 0 : index
    %11 = vector.load %arg6[%c0_9, %c0_10] : memref<1x128xf32, #tpu.memory_space<vmem>>, vector<1x128xf32>
    %cst_11 = arith.constant dense<0.000000e+00> : vector<256xf32>
    %12 = vector.multi_reduction <add>, %9, %cst_11 [1] : vector<256x128xf32> to vector<256xf32>
    %13 = vector.shape_cast %12 : vector<256xf32> to vector<256x1xf32>
    %cst_12 = arith.constant 1.280000e+02 : f32
    %14 = vector.broadcast %cst_12 : f32 to vector<256x1xf32>
    %15 = arith.divf %13, %14 : vector<256x1xf32>
    %16 = vector.broadcast %15 : vector<256x1xf32> to vector<256x128xf32>
    %17 = arith.subf %9, %16 : vector<256x128xf32>
    %18 = arith.mulf %17, %17 : vector<256x128xf32>
    %cst_13 = arith.constant dense<0.000000e+00> : vector<256xf32>
    %19 = vector.multi_reduction <add>, %18, %cst_13 [1] : vector<256x128xf32> to vector<256xf32>
    %20 = vector.shape_cast %19 : vector<256xf32> to vector<256x1xf32>
    %cst_14 = arith.constant 1.280000e+02 : f32
    %21 = vector.broadcast %cst_14 : f32 to vector<256x1xf32>
    %22 = arith.divf %20, %21 : vector<256x1xf32>
    %23 = vector.broadcast %15 : vector<256x1xf32> to vector<256x128xf32>
    %24 = arith.subf %9, %23 : vector<256x128xf32>
    %cst_15 = arith.constant 9.99999996E-13 : f32
    %25 = vector.broadcast %cst_15 : f32 to vector<256x1xf32>
    %26 = arith.addf %22, %25 : vector<256x1xf32>
    %27 = math.rsqrt %26 : vector<256x1xf32>
    %28 = vector.broadcast %27 : vector<256x1xf32> to vector<256x128xf32>
    %29 = arith.mulf %24, %28 : vector<256x128xf32>
    %30 = vector.broadcast %10 : vector<1x128xf32> to vector<256x128xf32>
    %31 = arith.mulf %29, %30 : vector<256x128xf32>
    %32 = vector.broadcast %11 : vector<1x128xf32> to vector<256x128xf32>
    %33 = arith.addf %31, %32 : vector<256x128xf32>
    %c0_16 = arith.constant 0 : index
    %c0_17 = arith.constant 0 : index
    %34 = vector.load %arg7[%c0_16, %c0_17] : memref<256x128xf32, #tpu.memory_space<vmem>>, vector<256x128xf32>
    tpu.vector_store %arg7[%c0_16, %c0_17], %33 {strides = array<i32>} : memref<256x128xf32, #tpu.memory_space<vmem>>, vector<256x128xf32>,
    return
  }
  func.func @transform_0(%arg0: i32) -> (i32, i32) {
    %c0_i32 = arith.constant 0 : i32
    %c0_i32_0 = arith.constant 0 : i32
    return %arg0, %c0_i32 : i32, i32
  }
  func.func @transform_1(%arg0: i32) -> (i32, i32) {
    %c0_i32 = arith.constant 0 : i32
    %c0_i32_0 = arith.constant 0 : i32
    %c0_i32_1 = arith.constant 0 : i32
    return %c0_i32, %c0_i32_0 : i32, i32
  }
  func.func @transform_2(%arg0: i32) -> (i32, i32) {
    %c0_i32 = arith.constant 0 : i32
    %c0_i32_0 = arith.constant 0 : i32
    %c0_i32_1 = arith.constant 0 : i32
    return %c0_i32, %c0_i32_0 : i32, i32
  }
  func.func @transform_3(%arg0: i32) -> (i32, i32) {
    %c0_i32 = arith.constant 0 : i32
    %c0_i32_0 = arith.constant 0 : i32
    return %arg0, %c0_i32 : i32, i32
  }
  func.func @transform_4(%arg0: i32) -> (i32, i32) {
    %c0_i32 = arith.constant 0 : i32
    %c0_i32_0 = arith.constant 0 : i32
    %c0_i32_1 = arith.constant 0 : i32
    return %c0_i32, %c0_i32_0 : i32, i32
  }
  func.func @transform_5(%arg0: i32) -> (i32, i32) {
    %c0_i32 = arith.constant 0 : i32
    %c0_i32_0 = arith.constant 0 : i32
    %c0_i32_1 = arith.constant 0 : i32
    return %c0_i32, %c0_i32_0 : i32, i32
  }
  func.func @transform_6(%arg0: i32) -> (i32, i32) {
    %c0_i32 = arith.constant 0 : i32
    %c0_i32_0 = arith.constant 0 : i32
    return %arg0, %c0_i32 : i32, i32
  }
}

</mosaic_0001>

<bundles_post_ra>
// kernel: bert_output.1
= control target key start
LH: loop header
LB: loop body
LE: loop exit
PB: predicated region body
PF: predicated region fallthrough
CT: control target
= control target key end

     0   :  { %s3142_s0 = inlined_call_operand.hbm [shape: f32[512,512], index: 0, kind: input, shape index: {}]   ;;  %s3143_s1 = inlined_call_operand.hbm [shape: f32[512,128], index: 1, kind: input, shape index: {}]   ;;  %s3144_s2 = inlined_call_operand.vmem [shape: f32[1,128], index: 2, kind: input, shape index: {}]   ;;  %s3145_s3 = inlined_call_operand.hbm [shape: f32[512,128], index: 3, kind: input, shape index: {}]   ;;  %s3146_s4 = inlined_call_operand.vmem [shape: f32[1,128], index: 4, kind: input, shape index: {}]   ;;  %s3147_s5 = inlined_call_operand.vmem [shape: f32[1,128], index: 5, kind: input, shape index: {}]   ;;  %s3148_s6 = inlined_call_operand.hbm [shape: f32[512,128], index: 6, kind: output, shape index: {}]  }
   0x1   :  { %3150 = sst [smem:[#allocation15_spill]] %s3142_s0 }
   0x2   :  { %3151 = sst [smem:[#allocation16_spill]] %s3143_s1 }
   0x3   :  { %11 = vsyncpa [#allocation3], 0 }
   0x4   :  { %13 = vsyncpa [#allocation3 + $0x1], 0 }
   0x5   :  { %14 = vsyncpa [#allocation6], 0 }
   0x6   :  { %15 = vsyncpa [#allocation4], 0 }
   0x7   :  { %17 = vsyncpa [#allocation4 + $0x1], 0  ;;  %s2289_s21 = smov 0   ;;  %s2291_s22 = smov 0  }
   0x8   :  { %s2293_s23 = smov 0   ;;  %s2295_s24 = smov 0  }
   0x9 LB: > { %3152 = sst [smem:[#allocation13_spill]] %s2240_s23  ;;  %s2310_s25 = sadd.s32 1, %s2244_s24   ;;  %s2244_s24 = sphi %s2295_s24, %s3166_s24   ;;  %s2240_s23 = sphi %s2293_s23, %s3163_s23   ;;  %s2236_s22 = sphi %s2291_s22, %s3165_s22   ;;  %s2232_s21 = sphi %s2289_s21, %s3164_s21  }
   0xa   : > { %s30_s26 = sadd.s32 1, %s2240_s23  ;;  %s27_s27 = ssub.s32 %s2244_s24, %s2310_s25 }
   0xb   : > { %p37_p0 = scmp.ne.s32.totalorder %s2240_s23, %s2236_s22  ;;  %p28_p1 = scmp.eq.s32.totalorder %s27_s27, 0 }
   0xc   : > { %p38_p2 = scmp.eq.s32.totalorder %s2244_s24, 0  ;;  %p1965_p4 = scmp.lt.s32.totalorder %s2244_s24, 2 }
   0xd   : > { %s2321_s28 = scalar_select %p28_p1, %s2240_s23, %s30_s26  }
   0xe   : > { %p39_p5 = por %p38_p2, %p37_p0  ;;  %s226_s29 = sand.u32 1, %s2244_s24  }
   0xf   : > { %3153 = sst [smem:[#allocation14_spill]] %s2321_s28  ;;  %s228_s30 = sand.u32 1, %s2240_s23  }
  0x10   : > { %s1918_s7 = sshll.u32 %s228_s30, 10  ;;  %s1936_s8 = sshll.u32 %s2244_s24, 10 }
  0x11   : > { %s3154_s0 = sld [smem:[#allocation15_spill]]  ;;  %s230_s13 = scalar_lea.vmem [#allocation2], %s1918_s7 }
  0x12   : > { %s239_s14 = sshll.u32 %s230_s13, 4  ;;  %p2334_p6 = pnand %p1965_p4, %p39_p5  ;;  %s240_s14 = int_to_ptr.vmem [resolvable:$true] %s239_s14 }
  0x13   : > { %s1922_s16 = sshll.u32 %s228_s30, 8  ;;  %s2338_s17 = scalar_lea.sflag [#allocation3], %s226_s29 }
  0x14   : > { %p2084_p8 = pneg %p2334_p6 }
  0x17   : > { %s236_s11 = scalar_lea.hbm %s3154_s0, %s1936_s8  ;;  %s2087_s27 = scalar_lea.hbm %s3154_s0, 2048 }
  0x18   : > { %s237_s12 = sshll.u32 %s236_s11, 4  ;;  %s238_s12 = int_to_ptr.hbm [resolvable:$true] %s237_s12 }
  0x19   : > { %s2080_s18 = sshra.s32 %s238_s12, 4  ;;  %s2081_s18 = int_to_ptr.hbm [resolvable:$true] %s2080_s18 }
  0x1a   : > { %s2082_s19 = scalar_lea.hbm %s2081_s18, 1024  ;;  %p2088_p11 = scmp.lt.s32.totalorder %s2081_s18, %s3154_s0 }
  0x1b   : > { %p2083_p7 = scmp.ne.s32.totalorder %s2081_s18, %s2082_s19  ;;  %p2089_p12 = scmp.lt.s32.totalorder %s2087_s27, %s2082_s19 }
  0x1d   : > { %p2085_p9 = pnand %p2084_p8, %p2083_p7  ;;  %p2090_p13 = por %p2089_p12, %p2088_p11 }
  0x1f   : > { %p2086_p10 = pneg %p2085_p9 }
  0x21   : > { %p2091_p1 = pnand %p2090_p13, %p2086_p10 }
  0x23   : > { %2094 = shalt.err (!%p2091_p1)
}
  0x24   : > { %s2246_s29 = smov 512   ;;  %s2247_s30 = smov 32  }
  0x25   : > { %1956 = dma.hbm_to_vmem [thread:$0]  (!%p2334_p6), %s238_s12, 16384, %s240_s14, %s2338_s17, %s2246_s29, %s2246_s29, %s2247_s30  }
  0x26   : > { %s253_s9 = scalar_lea.vmem [#allocation7], %s1922_s16  ;;  %s2357_s11 = sadd.s32 4294967295, %s2244_s24  }
  0x27   : > { %s2354_s10 = sshll.u32 %s253_s9, 4  ;;  %s1914_s13 = sadd.s32 4294967294, %s2244_s24   ;;  %s262_s10 = int_to_ptr.vmem [resolvable:$true] %s2354_s10 }
  0x28   : > { %p43_p2 = scmp.ne.s32.totalorder %s2236_s22, %s2232_s21  ;;  %p44_p4 = scmp.eq.s32.totalorder %s2357_s11, 0 }
  0x29   : > { %p177_p5 = scmp.eq.s32.totalorder %s2357_s11, 1  ;;  %p183_p7 = scmp.eq.s32.totalorder %s1914_s13, 1 }
  0x2a   : > { %p1915_p9 = scmp.ge.s32.totalorder %s2244_s24, 1  ;;  %p2367_p10 = por %p44_p4, %p43_p2 }
  0x2b   : > { %p2374_p11 = por %p177_p5, %p37_p0  ;;  %p2378_p12 = por %p183_p7, %p43_p2 }
  0x2c   : > { %p190_p13 = scmp.lt.s32.totalorder %s2244_s24, 3  ;;  %s3159_s1 = sld [smem:[#allocation16_spill]] }
  0x2d   : > { %s2248_s27 = smov [#allocation5]   ;;  %s1937_s8 = sshll.u32 %s2244_s24, 8 }
  0x2e   : > { %p2386_p1 = pnand %p1915_p9, %p190_p13  ;;  %s203_s7 = sshll.u32 %s2248_s27, 4  ;;  %s204_s7 = int_to_ptr.vmem [resolvable:$true] %s203_s7 }
  0x2f   : > { %s258_s9 = scalar_lea.hbm %s3145_s3, %s1937_s8  ;;  %s2249_s18 = smov 128  }
  0x30   : > { %p1949_p0 = pneg %p2386_p1  ;;  %s259_s13 = sshll.u32 %s258_s9, 4  ;;  %s260_s13 = int_to_ptr.hbm [resolvable:$true] %s259_s13 }
  0x31   : > { %s2250_s19 = smov 8   ;;  %s2140_s0 = sshra.s32 %s260_s13, 4  ;;  %s2141_s0 = int_to_ptr.hbm [resolvable:$true] %s2140_s0 }
  0x32   : > { %s201_s20 = sshll.u32 %s3159_s1, 4  ;;  %p1950_p2 = pnand %p1949_p0, %p44_p4  ;;  %s202_s20 = int_to_ptr.hbm [resolvable:$true] %s201_s20 }
  0x33   : > { %s2142_s1 = scalar_lea.hbm %s2141_s0, 256  ;;  %s2147_s23 = scalar_lea.hbm %s3145_s3, 512 }
  0x34   : > { %1952 = dma.hbm_to_vmem [thread:$0]  (!%p1950_p2), %s202_s20, 8192, %s204_s7, [#allocation6], %s2249_s18, %s2249_s18, %s2250_s19  }
  0x35   : > { %p2143_p5 = scmp.ne.s32.totalorder %s2141_s0, %s2142_s1  ;;  %p2148_p13 = scmp.lt.s32.totalorder %s2141_s0, %s3145_s3 }
  0x36   : > { %p2149_p0 = scmp.lt.s32.totalorder %s2147_s23, %s2142_s1 }
  0x37   : > { %p2145_p7 = pnand %p2143_p5, %p2084_p8 }
  0x38   : > { %p2150_p3 = por %p2149_p0, %p2148_p13 }
  0x39   : > { %p2146_p9 = pneg %p2145_p7 }
  0x3b   : > { %p2151_p2 = pnand %p2150_p3, %p2146_p9 }
  0x3d   : > { %2154 = shalt.err (!%p2151_p2)
}
  0x3e   : > { %1959 = dma.hbm_to_vmem [thread:$0]  (!%p2334_p6), %s260_s13, 4096, %s262_s10, %s2338_s17, %s2249_s18, %s2249_s18, %s2250_s19  }
  0x3f   : > { %273 = sbr.rel (%p2386_p1) target bundleno = 766 (0x2fe), region = 44  ;;  %s275_s28 = sand.u32 (!%p2386_p1), 1, %s2357_s11  }
  0x40   : > { %s2415_s20 = sand.u32 (!%p2386_p1), 1, %s2236_s22   ;;  %s276_s0 = scalar_lea.sflag (!%p2386_p1), [#allocation3], %s275_s28 }
  0x41   : > { %s1926_s7 = sshll.u32 (!%p2386_p1), %s2415_s20, 10 }
  0x42   : > { %s2418_s1 = scalar_lea.vmem (!%p2386_p1), [#allocation2], %s1926_s7 }
  0x44   : > { %2215 = dma.done.wait (%p2367_p10), %s276_s0, 16384  }
  0x45   : > { %2217 = vsyncadd (%p2367_p10), %s276_s0, 4294950912 }
  0x46   : > { %2219 = dma.done.wait (%p44_p4), [#allocation6], 8192  }
  0x47   : > { %2221 = vsyncadd (%p44_p4), [#allocation6], 4294959104  ;;  %s1928_s23 = sshll.u32 %s2415_s20, 8 }
  0x48   : > { %s2431_s15 = scalar_lea.vmem [#allocation7], %s1928_s23 }
  0x49   : > { %2223 = dma.done.wait (%p2367_p10), %s276_s0, 4096  }
  0x4a   : > { %2225 = vsyncadd (%p2367_p10), %s276_s0, 4294963200  ;;  %v538_v0 = vld [vmem:[#allocation5 + $0x70] sm:$0xff]  ;;  %v539_v1 = vld [vmem:[#allocation5 + $0x78] sm:$0xff]  ;;  %s2865_s19 = scalar_lea.vmem [#allocation8], %s1928_s23  ;;  %s1938_s7 = sshll.u32 %s2357_s11, 8 }
  0x4b   : > { %v554_v2 = vld [vmem:[#allocation5 + $0xf0] sm:$0xff]  ;;  %v595_v3 = vpack.c.bf16 %v539_v1, %v538_v0  ;;  %v555_v4 = vld [vmem:[#allocation5 + $0xf8] sm:$0xff]  ;;  %v536_v11 = vld [vmem:[#allocation5 + $0x60] sm:$0xff]  ;;  %s1807_s23 = scalar_lea.hbm %s3148_s6, %s1938_s7  ;;  %s1796_s17 = scalar_lea.sflag [#allocation4], %s2415_s20 }
  0x4c   : > { %v570_v5 = vld [vmem:[#allocation5 + $0x170] sm:$0xff]  ;;  %v571_v6 = vld [vmem:[#allocation5 + $0x178] sm:$0xff]  ;;  %v603_v7 = vpack.c.bf16 %v555_v4, %v554_v2  ;;  %v537_v13 = vld [vmem:[#allocation5 + $0x68] sm:$0xff]  ;;  %s1810_s11 = sshll.u32 %s1807_s23, 4  ;;  %s2190_s9 = scalar_lea.hbm %s3148_s6, 512  ;;  %s1811_s11 = int_to_ptr.hbm [resolvable:$true] %s1810_s11 }
  0x4d   : > { %v611_v8 = vpack.c.bf16 %v571_v6, %v570_v5  ;;  %v586_v9 = vld [vmem:[#allocation5 + $0x1f0] sm:$0xff]  ;;  %v587_v10 = vld [vmem:[#allocation5 + $0x1f8] sm:$0xff]  ;;  %624 = vmatpush.bf16.msra.mxu0 %v595_v3  ;;  %v552_v14 = vld [vmem:[#allocation5 + $0xe0] sm:$0xff]  ;;  %v594_v16 = vpack.c.bf16 %v537_v13, %v536_v11  ;;  %s2184_s10 = sshra.s32 %s1811_s11, 4  ;;  %s2185_s10 = int_to_ptr.hbm [resolvable:$true] %s2184_s10 }
  0x4e   : > { %v619_v12 = vpack.c.bf16 %v587_v10, %v586_v9  ;;  %v553_v15 = vld [vmem:[#allocation5 + $0xe8] sm:$0xff]  ;;  %713 = vmatpush.bf16.msra.mxu1 %v603_v7  ;;  %v568_v18 = vld [vmem:[#allocation5 + $0x160] sm:$0xff]  ;;  %v534_v23 = vld [vmem:[#allocation5 + $0x50] sm:$0xff]  ;;  %s2186_s12 = scalar_lea.hbm %s2185_s10, 256  ;;  %p2191_p4 = scmp.lt.s32.totalorder %s2185_s10, %s3148_s6 }
  0x4f   : > { %802 = vmatpush.bf16.msra.mxu2 %v611_v8  ;;  %v602_v17 = vpack.c.bf16 %v553_v15, %v552_v14  ;;  %v569_v19 = vld [vmem:[#allocation5 + $0x168] sm:$0xff]  ;;  %v584_v20 = vld [vmem:[#allocation5 + $0x1e0] sm:$0xff]  ;;  %v535_v24 = vld [vmem:[#allocation5 + $0x58] sm:$0xff]  ;;  %p2187_p3 = scmp.ne.s32.totalorder %s2185_s10, %s2186_s12  ;;  %p2192_p10 = scmp.lt.s32.totalorder %s2190_s9, %s2186_s12 }
  0x50   : > { %891 = vmatpush.bf16.msra.mxu3 %v619_v12  ;;  %v610_v21 = vpack.c.bf16 %v569_v19, %v568_v18  ;;  %v585_v22 = vld [vmem:[#allocation5 + $0x1e8] sm:$0xff]  ;;  %v550_v26 = vld [vmem:[#allocation5 + $0xd0] sm:$0xff]  ;;  %v551_v27 = vld [vmem:[#allocation5 + $0xd8] sm:$0xff]  ;;  %v593_v29 = vpack.c.bf16 %v535_v24, %v534_v23 }
  0x51   : > { %v618_v25 = vpack.c.bf16 %v585_v22, %v584_v20  ;;  %v566_v28 = vld [vmem:[#allocation5 + $0x150] sm:$0xff]  ;;  %625 = vmatpush.bf16.msra.mxu0 %v594_v16  ;;  %v567_v30 = vld [vmem:[#allocation5 + $0x158] sm:$0xff]  ;;  %v601_v33 = vpack.c.bf16 %v551_v27, %v550_v26  ;;  %v532_v35 = vld [vmem:[#allocation5 + $0x40] sm:$0xff]  ;;  %p2188_p6 = pnand %p2187_p3, %p2374_p11  ;;  %p2193_p1 = por %p2192_p10, %p2191_p4 }
  0x52   : > { %v582_v31 = vld [vmem:[#allocation5 + $0x1d0] sm:$0xff]  ;;  %v583_v32 = vld [vmem:[#allocation5 + $0x1d8] sm:$0xff]  ;;  %714 = vmatpush.bf16.msra.mxu1 %v602_v17  ;;  %v609_v34 = vpack.c.bf16 %v567_v30, %v566_v28  ;;  %v533_v36 = vld [vmem:[#allocation5 + $0x48] sm:$0xff] }
  0x53   : > { %803 = vmatpush.bf16.msra.mxu2 %v610_v21  ;;  %v548_v37 = vld [vmem:[#allocation5 + $0xc0] sm:$0xff]  ;;  %v617_v38 = vpack.c.bf16 %v583_v32, %v582_v31  ;;  %v549_v39 = vld [vmem:[#allocation5 + $0xc8] sm:$0xff]  ;;  %v592_v44 = vpack.c.bf16 %v533_v36, %v532_v35  ;;  %v530_v47 = vld [vmem:[#allocation5 + $0x30] sm:$0xff]  ;;  %p2189_p8 = pneg %p2188_p6 }
  0x54   : > { %892 = vmatpush.bf16.msra.mxu3 %v618_v25  ;;  %v564_v40 = vld [vmem:[#allocation5 + $0x140] sm:$0xff]  ;;  %v565_v41 = vld [vmem:[#allocation5 + $0x148] sm:$0xff]  ;;  %v600_v45 = vpack.c.bf16 %v549_v39, %v548_v37  ;;  %v531_v48 = vld [vmem:[#allocation5 + $0x38] sm:$0xff] }
  0x55   : > { %v580_v42 = vld [vmem:[#allocation5 + $0x1c0] sm:$0xff]  ;;  %v581_v43 = vld [vmem:[#allocation5 + $0x1c8] sm:$0xff]  ;;  %626 = vmatpush.bf16.msra.mxu0 %v593_v29  ;;  %v608_v46 = vpack.c.bf16 %v565_v41, %v564_v40  ;;  %v546_v49 = vld [vmem:[#allocation5 + $0xb0] sm:$0xff]  ;;  %v591_v56 = vpack.c.bf16 %v531_v48, %v530_v47  ;;  %p2194_p5 = pnand %p2193_p1, %p2189_p8 }
  0x56   : > { %715 = vmatpush.bf16.msra.mxu1 %v601_v33  ;;  %v616_v50 = vpack.c.bf16 %v581_v43, %v580_v42  ;;  %v547_v51 = vld [vmem:[#allocation5 + $0xb8] sm:$0xff]  ;;  %v562_v52 = vld [vmem:[#allocation5 + $0x130] sm:$0xff]  ;;  %v528_v59 = vld [vmem:[#allocation5 + $0x20] sm:$0xff] }
  0x57   : > { %804 = vmatpush.bf16.msra.mxu2 %v609_v34  ;;  %v563_v53 = vld [vmem:[#allocation5 + $0x138] sm:$0xff]  ;;  %v578_v54 = vld [vmem:[#allocation5 + $0x1b0] sm:$0xff]  ;;  %v599_v57 = vpack.c.bf16 %v547_v51, %v546_v49  ;;  %v529_v60 = vld [vmem:[#allocation5 + $0x28] sm:$0xff] }
  0x58   : > { %893 = vmatpush.bf16.msra.mxu3 %v617_v38  ;;  %v579_v55 = vld [vmem:[#allocation5 + $0x1b8] sm:$0xff]  ;;  %v607_v58 = vpack.c.bf16 %v563_v53, %v562_v52  ;;  %v544_v61 = vld [vmem:[#allocation5 + $0xa0] sm:$0xff]  ;;  %v545_v63 = vld [vmem:[#allocation5 + $0xa8] sm:$0xff]  ;;  %v590_v4 = vpack.c.bf16 %v529_v60, %v528_v59 }
  0x59   : > { %627 = vmatpush.bf16.msra.mxu0 %v592_v44  ;;  %v615_v62 = vpack.c.bf16 %v579_v55, %v578_v54  ;;  %v560_v0 = vld [vmem:[#allocation5 + $0x120] sm:$0xff]  ;;  %v561_v1 = vld [vmem:[#allocation5 + $0x128] sm:$0xff]  ;;  %v598_v5 = vpack.c.bf16 %v545_v63, %v544_v61  ;;  %v526_v7 = vld [vmem:[#allocation5 + $0x10] sm:$0xff] }
  0x5a   : > { %716 = vmatpush.bf16.msra.mxu1 %v600_v45  ;;  %v576_v2 = vld [vmem:[#allocation5 + $0x1a0] sm:$0xff]  ;;  %v577_v3 = vld [vmem:[#allocation5 + $0x1a8] sm:$0xff]  ;;  %v606_v6 = vpack.c.bf16 %v561_v1, %v560_v0  ;;  %v527_v8 = vld [vmem:[#allocation5 + $0x18] sm:$0xff] }
  0x5b   : > { %805 = vmatpush.bf16.msra.mxu2 %v608_v46  ;;  %v542_v9 = vld [vmem:[#allocation5 + $0x90] sm:$0xff]  ;;  %v614_v10 = vpack.c.bf16 %v577_v3, %v576_v2  ;;  %v543_v11 = vld [vmem:[#allocation5 + $0x98] sm:$0xff]  ;;  %v589_v16 = vpack.c.bf16 %v527_v8, %v526_v7  ;;  %v524_v17 = vld [vmem:[#allocation5] sm:$0xff] }
  0x5c   : > { %894 = vmatpush.bf16.msra.mxu3 %v616_v50  ;;  %v558_v12 = vld [vmem:[#allocation5 + $0x110] sm:$0xff]  ;;  %v559_v13 = vld [vmem:[#allocation5 + $0x118] sm:$0xff]  ;;  %v525_v18 = vld [vmem:[#allocation5 + $0x8] sm:$0xff]  ;;  %v597_v19 = vpack.c.bf16 %v543_v11, %v542_v9 }
  0x5d   : > { %628 = vmatpush.bf16.msra.mxu0 %v591_v56  ;;  %v574_v14 = vld [vmem:[#allocation5 + $0x190] sm:$0xff]  ;;  %v575_v15 = vld [vmem:[#allocation5 + $0x198] sm:$0xff]  ;;  %v605_v20 = vpack.c.bf16 %v559_v13, %v558_v12  ;;  %v540_v21 = vld [vmem:[#allocation5 + $0x80] sm:$0xff]  ;;  %v588_v31 = vpack.c.bf16 %v525_v18, %v524_v17 }
  0x5e   : > { %717 = vmatpush.bf16.msra.mxu1 %v599_v57  ;;  %v541_v22 = vld [vmem:[#allocation5 + $0x88] sm:$0xff]  ;;  %v556_v23 = vld [vmem:[#allocation5 + $0x100] sm:$0xff]  ;;  %v613_v24 = vpack.c.bf16 %v575_v15, %v574_v14  ;;  %v334_v35 = vld [vmem:[%s2418_s1 + $0x10] sm:$0xff] }
  0x5f   : > { %806 = vmatpush.bf16.msra.mxu2 %v607_v58  ;;  %v557_v25 = vld [vmem:[#allocation5 + $0x108] sm:$0xff]  ;;  %v572_v26 = vld [vmem:[#allocation5 + $0x180] sm:$0xff]  ;;  %v596_v33 = vpack.c.bf16 %v541_v22, %v540_v21  ;;  %v338_v36 = vld [vmem:[%s2418_s1 + $0x30] sm:$0xff] }
  0x60   : > { %895 = vmatpush.bf16.msra.mxu3 %v615_v62  ;;  %v573_v27 = vld [vmem:[#allocation5 + $0x188] sm:$0xff]  ;;  %v332_v28 = vld [vmem:[%s2418_s1] sm:$0xff]  ;;  %v604_v34 = vpack.c.bf16 %v557_v25, %v556_v23  ;;  %v335_v38 = vld [vmem:[%s2418_s1 + $0x18] sm:$0xff]  ;;  %v462_v42 = vpack.c.bf16 %v338_v36, %v334_v35 }
  0x61   : > { %629 = vmatpush.bf16.msra.mxu0 %v590_v4  ;;  %v336_v29 = vld [vmem:[%s2418_s1 + $0x20] sm:$0xff]  ;;  %v333_v30 = vld [vmem:[%s2418_s1 + $0x8] sm:$0xff]  ;;  %v612_v37 = vpack.c.bf16 %v573_v27, %v572_v26  ;;  %v339_v39 = vld [vmem:[%s2418_s1 + $0x38] sm:$0xff] }
  0x62   : > { %718 = vmatpush.bf16.msra.mxu1 %v598_v5  ;;  %v337_v32 = vld [vmem:[%s2418_s1 + $0x28] sm:$0xff]  ;;  %v460_v40 = vpack.c.bf16 %v336_v29, %v332_v28  ;;  %v463_v43 = vpack.c.bf16 %v339_v39, %v335_v38  ;;  %v340_v44 = vld [vmem:[%s2418_s1 + $0x40] sm:$0xff]  ;;  %v342_v48 = vld [vmem:[%s2418_s1 + $0x50] sm:$0xff] }
  0x63   : > { %807 = vmatpush.bf16.msra.mxu2 %v606_v6  ;;  %v461_v41 = vpack.c.bf16 %v337_v32, %v333_v30  ;;  %v344_v45 = vld [vmem:[%s2418_s1 + $0x60] sm:$0xff]  ;;  %v341_v46 = vld [vmem:[%s2418_s1 + $0x48] sm:$0xff]  ;;  %v346_v49 = vld [vmem:[%s2418_s1 + $0x70] sm:$0xff] }
  0x64   : > { %896 = vmatpush.bf16.msra.mxu3 %v614_v10  ;;  %v345_v47 = vld [vmem:[%s2418_s1 + $0x68] sm:$0xff]  ;;  %v343_v50 = vld [vmem:[%s2418_s1 + $0x58] sm:$0xff]  ;;  %v464_v52 = vpack.c.bf16 %v344_v45, %v340_v44  ;;  %v466_v54 = vpack.c.bf16 %v346_v49, %v342_v48  ;;  %v348_v56 = vld [vmem:[%s2418_s1 + $0x80] sm:$0xff] }
  0x65   : > { %630 = vmatpush.bf16.msra.mxu0 %v589_v16  ;;  %v347_v51 = vld [vmem:[%s2418_s1 + $0x78] sm:$0xff]  ;;  %v465_v53 = vpack.c.bf16 %v345_v47, %v341_v46  ;;  %v352_v57 = vld [vmem:[%s2418_s1 + $0xa0] sm:$0xff]  ;;  %v349_v58 = vld [vmem:[%s2418_s1 + $0x88] sm:$0xff] }
  0x66   : > { %719 = vmatpush.bf16.msra.mxu1 %v597_v19  ;;  %v467_v55 = vpack.c.bf16 %v347_v51, %v343_v50  ;;  %v353_v59 = vld [vmem:[%s2418_s1 + $0xa8] sm:$0xff]  ;;  %v350_v60 = vld [vmem:[%s2418_s1 + $0x90] sm:$0xff]  ;;  %v351_v62 = vld [vmem:[%s2418_s1 + $0x98] sm:$0xff]  ;;  %v468_v0 = vpack.c.bf16 %v352_v57, %v348_v56 }
  0x67   : > { %808 = vmatpush.bf16.msra.mxu2 %v605_v20  ;;  %v354_v61 = vld [vmem:[%s2418_s1 + $0xb0] sm:$0xff]  ;;  %v355_v63 = vld [vmem:[%s2418_s1 + $0xb8] sm:$0xff]  ;;  %v469_v1 = vpack.c.bf16 %v353_v59, %v349_v58  ;;  %v356_v4 = vld [vmem:[%s2418_s1 + $0xc0] sm:$0xff] }
  0x68   : > { %897 = vmatpush.bf16.msra.mxu3 %v613_v24  ;;  %v470_v2 = vpack.c.bf16 %v354_v61, %v350_v60  ;;  %v471_v3 = vpack.c.bf16 %v355_v63, %v351_v62  ;;  %v360_v5 = vld [vmem:[%s2418_s1 + $0xe0] sm:$0xff]  ;;  %v357_v6 = vld [vmem:[%s2418_s1 + $0xc8] sm:$0xff]  ;;  %v358_v8 = vld [vmem:[%s2418_s1 + $0xd0] sm:$0xff] }
  0x69   : > { %631 = vmatpush.bf16.msra.mxu0 %v588_v31  ;;  %v361_v7 = vld [vmem:[%s2418_s1 + $0xe8] sm:$0xff]  ;;  %v362_v9 = vld [vmem:[%s2418_s1 + $0xf0] sm:$0xff]  ;;  %v359_v10 = vld [vmem:[%s2418_s1 + $0xd8] sm:$0xff]  ;;  %v472_v12 = vpack.c.bf16 %v360_v5, %v356_v4 }
  0x6a   : > { %720 = vmatpush.bf16.msra.mxu1 %v596_v33  ;;  %v363_v11 = vld [vmem:[%s2418_s1 + $0xf8] sm:$0xff]  ;;  %v473_v13 = vpack.c.bf16 %v361_v7, %v357_v6  ;;  %v474_v14 = vpack.c.bf16 %v362_v9, %v358_v8  ;;  %v364_v16 = vld [vmem:[%s2418_s1 + $0x100] sm:$0xff]  ;;  %v365_v18 = vld [vmem:[%s2418_s1 + $0x108] sm:$0xff] }
  0x6b   : > { %809 = vmatpush.bf16.msra.mxu2 %v604_v34  ;;  %v475_v15 = vpack.c.bf16 %v363_v11, %v359_v10  ;;  %v368_v17 = vld [vmem:[%s2418_s1 + $0x120] sm:$0xff]  ;;  %v369_v19 = vld [vmem:[%s2418_s1 + $0x128] sm:$0xff]  ;;  %v366_v20 = vld [vmem:[%s2418_s1 + $0x110] sm:$0xff] }
  0x6c   : > { %898 = vmatpush.bf16.msra.mxu3 %v612_v37  ;;  %632 = vmatmul.bf16.vlgmr.msra.gmra.mxu0 %v460_v40  ;;  %v370_v21 = vld [vmem:[%s2418_s1 + $0x130] sm:$0xff]  ;;  %v367_v22 = vld [vmem:[%s2418_s1 + $0x118] sm:$0xff]  ;;  %v476_v24 = vpack.c.bf16 %v368_v17, %v364_v16  ;;  %v477_v25 = vpack.c.bf16 %v369_v19, %v365_v18  ;;  %v372_v28 = vld [vmem:[%s2418_s1 + $0x140] sm:$0xff] }
  0x6d   : > { %721 = vmatmul.bf16.vlgmr.msra.gmra.mxu1 %v461_v41  ;;  %v371_v23 = vld [vmem:[%s2418_s1 + $0x138] sm:$0xff]  ;;  %v478_v26 = vpack.c.bf16 %v370_v21, %v366_v20  ;;  %v376_v29 = vld [vmem:[%s2418_s1 + $0x160] sm:$0xff]  ;;  %v373_v30 = vld [vmem:[%s2418_s1 + $0x148] sm:$0xff] }
  0x6e   : > { %810 = vmatmul.bf16.vlgmr.msra.gmra.mxu2 %v462_v42  ;;  %v479_v27 = vpack.c.bf16 %v371_v23, %v367_v22  ;;  %v377_v31 = vld [vmem:[%s2418_s1 + $0x168] sm:$0xff]  ;;  %v374_v32 = vld [vmem:[%s2418_s1 + $0x150] sm:$0xff]  ;;  %v375_v34 = vld [vmem:[%s2418_s1 + $0x158] sm:$0xff]  ;;  %v480_v36 = vpack.c.bf16 %v376_v29, %v372_v28 }
  0x6f   : > { %899 = vmatmul.bf16.vlgmr.msra.gmra.mxu3 %v463_v43  ;;  %v378_v33 = vld [vmem:[%s2418_s1 + $0x170] sm:$0xff]  ;;  %v379_v35 = vld [vmem:[%s2418_s1 + $0x178] sm:$0xff]  ;;  %v481_v37 = vpack.c.bf16 %v377_v31, %v373_v30  ;;  %v380_v40 = vld [vmem:[%s2418_s1 + $0x180] sm:$0xff] }
  0x70   : > { %v482_v38 = vpack.c.bf16 %v378_v33, %v374_v32  ;;  %v483_v39 = vpack.c.bf16 %v379_v35, %v375_v34  ;;  %v384_v41 = vld [vmem:[%s2418_s1 + $0x1a0] sm:$0xff]  ;;  %v381_v42 = vld [vmem:[%s2418_s1 + $0x188] sm:$0xff]  ;;  %v382_v44 = vld [vmem:[%s2418_s1 + $0x190] sm:$0xff] }
  0x71   : > { %v385_v43 = vld [vmem:[%s2418_s1 + $0x1a8] sm:$0xff]  ;;  %v386_v45 = vld [vmem:[%s2418_s1 + $0x1b0] sm:$0xff]  ;;  %v383_v46 = vld [vmem:[%s2418_s1 + $0x198] sm:$0xff]  ;;  %v484_v48 = vpack.c.bf16 %v384_v41, %v380_v40 }
  0x72   : > { %v387_v47 = vld [vmem:[%s2418_s1 + $0x1b8] sm:$0xff]  ;;  %v485_v49 = vpack.c.bf16 %v385_v43, %v381_v42  ;;  %v486_v50 = vpack.c.bf16 %v386_v45, %v382_v44  ;;  %v390_v56 = vld [vmem:[%s2418_s1 + $0x1d0] sm:$0xff]  ;;  %v401_v4 = vld [vmem:[%s2418_s1 + $0x228] sm:$0xff] }
  0x73   : > { %v487_v51 = vpack.c.bf16 %v387_v47, %v383_v46  ;;  %v394_v57 = vld [vmem:[%s2418_s1 + $0x1f0] sm:$0xff]  ;;  %v391_v58 = vld [vmem:[%s2418_s1 + $0x1d8] sm:$0xff]  ;;  %v980_v22 = vld [vmem:[%s2431_s15] sm:$0xff] }
  0x74   : > { %v395_v59 = vld [vmem:[%s2418_s1 + $0x1f8] sm:$0xff]  ;;  %v490_v62 = vpack.c.bf16 %v394_v57, %v390_v56  ;;  %v398_v5 = vld [vmem:[%s2418_s1 + $0x210] sm:$0xff]  ;;  %v405_v28 = vld [vmem:[%s2418_s1 + $0x248] sm:$0xff] }
  0x75   : > { %v491_v63 = vpack.c.bf16 %v395_v59, %v391_v58  ;;  %v402_v6 = vld [vmem:[%s2418_s1 + $0x230] sm:$0xff]  ;;  %v399_v7 = vld [vmem:[%s2418_s1 + $0x218] sm:$0xff]  ;;  %v409_v29 = vld [vmem:[%s2418_s1 + $0x268] sm:$0xff] }
  0x76   : > { %v403_v8 = vld [vmem:[%s2418_s1 + $0x238] sm:$0xff]  ;;  %v406_v30 = vld [vmem:[%s2418_s1 + $0x250] sm:$0xff]  ;;  %v497_v40 = vpack.c.bf16 %v409_v29, %v405_v28  ;;  %v981_v45 = vld [vmem:[%s2431_s15 + $0x8] sm:$0xff] }
  0x77   : > { %v410_v31 = vld [vmem:[%s2418_s1 + $0x270] sm:$0xff]  ;;  %v407_v33 = vld [vmem:[%s2418_s1 + $0x258] sm:$0xff]  ;;  %v412_v58 = vld [vmem:[%s2418_s1 + $0x280] sm:$0xff] }
  0x78   : > { %v411_v34 = vld [vmem:[%s2418_s1 + $0x278] sm:$0xff]  ;;  %v498_v41 = vpack.c.bf16 %v410_v31, %v406_v30  ;;  %v416_v59 = vld [vmem:[%s2418_s1 + $0x2a0] sm:$0xff]  ;;  %v421_v30 = vld [vmem:[%s2418_s1 + $0x2c8] sm:$0xff] }
  0x79   : > { %v499_v44 = vpack.c.bf16 %v411_v34, %v407_v33  ;;  %v420_v28 = vld [vmem:[%s2418_s1 + $0x2c0] sm:$0xff]  ;;  %v425_v31 = vld [vmem:[%s2418_s1 + $0x2e8] sm:$0xff]  ;;  %v426_v33 = vld [vmem:[%s2418_s1 + $0x2f0] sm:$0xff] }
  0x7a   : > { %v424_v29 = vld [vmem:[%s2418_s1 + $0x2e0] sm:$0xff] }
  0x7c   : > { %637 = vmatmul.bf16.gmra.mxu0 %v464_v52  ;;  %v388_v52 = vld [vmem:[%s2418_s1 + $0x1c0] sm:$0xff] }
  0x7d   : > { %726 = vmatmul.bf16.gmra.mxu1 %v465_v53  ;;  %v392_v53 = vld [vmem:[%s2418_s1 + $0x1e0] sm:$0xff] }
  0x7e   : > { %815 = vmatmul.bf16.gmra.mxu2 %v466_v54  ;;  %v389_v54 = vld [vmem:[%s2418_s1 + $0x1c8] sm:$0xff]  ;;  %v488_v60 = vpack.c.bf16 %v392_v53, %v388_v52 }
  0x7f   : > { %904 = vmatmul.bf16.gmra.mxu3 %v467_v55  ;;  %v393_v55 = vld [vmem:[%s2418_s1 + $0x1e8] sm:$0xff] }
  0x80   : > { %v489_v61 = vpack.c.bf16 %v393_v55, %v389_v54  ;;  %v982_v54 = vld [vmem:[%s2431_s15 + $0x10] sm:$0xff] }
  0x8c   : > { %642 = vmatmul.bf16.gmra.mxu0 %v468_v0  ;;  %v2504_v0 = vld [vmem:[%s3144_s2] ss:$0 sm:$0xff] }
  0x8d   : > { %731 = vmatmul.bf16.gmra.mxu1 %v469_v1  ;;  %v396_v1 = vld [vmem:[%s2418_s1 + $0x200] sm:$0xff] }
  0x8e   : > { %820 = vmatmul.bf16.gmra.mxu2 %v470_v2  ;;  %v400_v2 = vld [vmem:[%s2418_s1 + $0x220] sm:$0xff] }
  0x8f   : > { %909 = vmatmul.bf16.gmra.mxu3 %v471_v3  ;;  %v397_v3 = vld [vmem:[%s2418_s1 + $0x208] sm:$0xff]  ;;  %v492_v9 = vpack.c.bf16 %v400_v2, %v396_v1  ;;  %v415_v2 = vld [vmem:[%s2418_s1 + $0x298] sm:$0xff] }
  0x90   : > { %v493_v11 = vpack.c.bf16 %v401_v4, %v397_v3  ;;  %v419_v3 = vld [vmem:[%s2418_s1 + $0x2b8] sm:$0xff] }
  0x9c   : > { %647 = vmatmul.bf16.gmra.mxu0 %v472_v12  ;;  %v494_v12 = vpack.c.bf16 %v402_v6, %v398_v5  ;;  %v500_v5 = vpack.c.bf16 %v416_v59, %v412_v58  ;;  %v986_v58 = vld [vmem:[%s2431_s15 + $0x30] sm:$0xff] }
  0x9d   : > { %736 = vmatmul.bf16.gmra.mxu1 %v473_v13 }
  0x9e   : > { %825 = vmatmul.bf16.gmra.mxu2 %v474_v14 }
  0x9f   : > { %914 = vmatmul.bf16.gmra.mxu3 %v475_v15  ;;  %v495_v15 = vpack.c.bf16 %v403_v8, %v399_v7 }
  0xac   : > { %652 = vmatmul.bf16.gmra.mxu0 %v476_v24 }
  0xad   : > { %741 = vmatmul.bf16.gmra.mxu1 %v477_v25 }
  0xae   : > { %830 = vmatmul.bf16.gmra.mxu2 %v478_v26  ;;  %v404_v26 = vld [vmem:[%s2418_s1 + $0x240] sm:$0xff] }
  0xaf   : > { %919 = vmatmul.bf16.gmra.mxu3 %v479_v27  ;;  %v408_v27 = vld [vmem:[%s2418_s1 + $0x260] sm:$0xff] }
  0xbc   : > { %657 = vmatmul.bf16.gmra.mxu0 %v480_v36  ;;  %v496_v36 = vpack.c.bf16 %v408_v27, %v404_v26 }
  0xbd   : > { %746 = vmatmul.bf16.gmra.mxu1 %v481_v37 }
  0xbe   : > { %835 = vmatmul.bf16.gmra.mxu2 %v482_v38 }
  0xbf   : > { %924 = vmatmul.bf16.gmra.mxu3 %v483_v39 }
  0xcc   : > { %662 = vmatmul.bf16.gmra.mxu0 %v484_v48 }
  0xcd   : > { %751 = vmatmul.bf16.gmra.mxu1 %v485_v49 }
  0xce   : > { %840 = vmatmul.bf16.gmra.mxu2 %v486_v50 }
  0xcf   : > { %929 = vmatmul.bf16.gmra.mxu3 %v487_v51 }
  0xdc   : > { %667 = vmatmul.bf16.gmra.mxu0 %v488_v60  ;;  %v413_v60 = vld [vmem:[%s2418_s1 + $0x288] sm:$0xff] }
  0xdd   : > { %756 = vmatmul.bf16.gmra.mxu1 %v489_v61  ;;  %v417_v61 = vld [vmem:[%s2418_s1 + $0x2a8] sm:$0xff] }
  0xde   : > { %845 = vmatmul.bf16.gmra.mxu2 %v490_v62  ;;  %v414_v62 = vld [vmem:[%s2418_s1 + $0x290] sm:$0xff] }
  0xdf   : > { %934 = vmatmul.bf16.gmra.mxu3 %v491_v63  ;;  %v418_v63 = vld [vmem:[%s2418_s1 + $0x2b0] sm:$0xff] }
  0xe9   : > { %v633_v10 = vpop.f32.mrf.mxu0 }
  0xea   : > { %v634_v13 = vadd.f32 %v2504_v0, %v633_v10  ;;  %v722_v14 = vpop.f32.mrf.mxu1  ;;  %v502_v10 = vpack.c.bf16 %v418_v63, %v414_v62  ;;  %v428_v62 = vld [vmem:[%s2418_s1 + $0x300] sm:$0xff] }
  0xeb   : > { %v432_v63 = vld [vmem:[%s2418_s1 + $0x320] sm:$0xff] }
  0xec   : > { %672 = vmatmul.bf16.gmra.mxu0 %v492_v9  ;;  %v723_v16 = vadd.f32 %v722_v14, %v634_v13  ;;  %v501_v9 = vpack.c.bf16 %v417_v61, %v413_v60  ;;  %v503_v13 = vpack.c.bf16 %v419_v3, %v415_v2  ;;  %v983_v14 = vld [vmem:[%s2431_s15 + $0x18] sm:$0xff]  ;;  %v433_v2 = vld [vmem:[%s2418_s1 + $0x328] sm:$0xff]  ;;  %v430_v3 = vld [vmem:[%s2418_s1 + $0x310] sm:$0xff] }
  0xed   : > { %761 = vmatmul.bf16.gmra.mxu1 %v493_v11 }
  0xee   : > { %850 = vmatmul.bf16.gmra.mxu2 %v494_v12 }
  0xef   : > { %939 = vmatmul.bf16.gmra.mxu3 %v495_v15 }
  0xf1   : > { %v811_v17 = vpop.f32.mrf.mxu2  ;;  %v635_v20 = vpop.f32.mrf.mxu0 }
  0xf2   : > { %v812_v18 = vadd.f32 %v811_v17, %v723_v16  ;;  %v900_v19 = vpop.f32.mrf.mxu3  ;;  %v724_v21 = vpop.f32.mrf.mxu1  ;;  %v636_v24 = vadd.f32 %v2504_v0, %v635_v20 }
  0xf4   : > { %v901_v23 = vadd.f32 %v900_v19, %v812_v18  ;;  %v725_v32 = vadd.f32 %v724_v21, %v636_v24 }
  0xf6   : > { %v2517_v25 = vadd.f32 %v980_v22, %v901_v23  ;;  %v984_v23 = vld [vmem:[%s2431_s15 + $0x20] sm:$0xff] }
  0xf8   : > { %1046 = vadd.xlane.f32.xlu0 %v2517_v25 }
  0xf9   : > { %v813_v35 = vpop.f32.mrf.mxu2  ;;  %v638_v39 = vpop.f32.mrf.mxu0 }
  0xfa   : > { %v814_v37 = vadd.f32 %v813_v35, %v725_v32  ;;  %v902_v38 = vpop.f32.mrf.mxu3  ;;  %v639_v42 = vadd.f32 %v2504_v0, %v638_v39  ;;  %v727_v43 = vpop.f32.mrf.mxu1  ;;  %v422_v32 = vld [vmem:[%s2418_s1 + $0x2d0] sm:$0xff]  ;;  %v423_v35 = vld [vmem:[%s2418_s1 + $0x2d8] sm:$0xff] }
  0xfc   : > { %v903_v46 = vadd.f32 %v902_v38, %v814_v37  ;;  %677 = vmatmul.bf16.gmra.mxu0 %v496_v36  ;;  %v728_v47 = vadd.f32 %v727_v43, %v639_v42  ;;  %v427_v36 = vld [vmem:[%s2418_s1 + $0x2f8] sm:$0xff]  ;;  %v504_v38 = vpack.c.bf16 %v424_v29, %v420_v28  ;;  %v505_v42 = vpack.c.bf16 %v425_v31, %v421_v30  ;;  %v988_v30 = vld [vmem:[%s2431_s15 + $0x40] sm:$0xff] }
  0xfd   : > { %766 = vmatmul.bf16.gmra.mxu1 %v497_v40  ;;  %v506_v43 = vpack.c.bf16 %v426_v33, %v422_v32 }
  0xfe   : > { %855 = vmatmul.bf16.gmra.mxu2 %v498_v41  ;;  %v2530_v48 = vadd.f32 %v981_v45, %v903_v46  ;;  %v507_v46 = vpack.c.bf16 %v427_v36, %v423_v35  ;;  %v440_v35 = vld [vmem:[%s2418_s1 + $0x360] sm:$0xff]  ;;  %v437_v36 = vld [vmem:[%s2418_s1 + $0x348] sm:$0xff] }
  0xff   : > { %944 = vmatmul.bf16.gmra.mxu3 %v499_v44 }
 0x100   : > { %1048 = vadd.xlane.f32.xlu0 %v2530_v48 }
 0x101   : > { %v816_v49 = vpop.f32.mrf.mxu2  ;;  %v640_v52 = vpop.f32.mrf.mxu0 }
 0x102   : > { %v817_v50 = vadd.f32 %v816_v49, %v728_v47  ;;  %v905_v51 = vpop.f32.mrf.mxu3  ;;  %v729_v53 = vpop.f32.mrf.mxu1  ;;  %v641_v56 = vadd.f32 %v2504_v0, %v640_v52  ;;  %v985_v47 = vld [vmem:[%s2431_s15 + $0x28] sm:$0xff] }
 0x104   : > { %v906_v55 = vadd.f32 %v905_v51, %v817_v50  ;;  %v730_v1 = vadd.f32 %v729_v53, %v641_v56 }
 0x106   : > { %v2535_v57 = vadd.f32 %v982_v54, %v906_v55 }
 0x108   : > { %1050 = vadd.xlane.f32.xlu1 %v2535_v57 }
 0x109   : > { %v818_v4 = vpop.f32.mrf.mxu2  ;;  %v643_v8 = vpop.f32.mrf.mxu0 }
 0x10a   : > { %v819_v6 = vadd.f32 %v818_v4, %v730_v1  ;;  %v907_v7 = vpop.f32.mrf.mxu3  ;;  %v644_v11 = vadd.f32 %v2504_v0, %v643_v8  ;;  %v732_v12 = vpop.f32.mrf.mxu1  ;;  %v429_v1 = vld [vmem:[%s2418_s1 + $0x308] sm:$0xff]  ;;  %v434_v4 = vld [vmem:[%s2418_s1 + $0x330] sm:$0xff] }
 0x10c   : > { %v908_v15 = vadd.f32 %v907_v7, %v819_v6  ;;  %682 = vmatmul.bf16.gmra.mxu0 %v500_v5  ;;  %v733_v16 = vadd.f32 %v732_v12, %v644_v11  ;;  %v431_v6 = vld [vmem:[%s2418_s1 + $0x318] sm:$0xff] }
 0x10d   : > { %771 = vmatmul.bf16.gmra.mxu1 %v501_v9  ;;  %v435_v7 = vld [vmem:[%s2418_s1 + $0x338] sm:$0xff]  ;;  %v508_v9 = vpack.c.bf16 %v432_v63, %v428_v62 }
 0x10e   : > { %860 = vmatmul.bf16.gmra.mxu2 %v502_v10  ;;  %v2548_v17 = vadd.f32 %v983_v14, %v908_v15  ;;  %v510_v14 = vpack.c.bf16 %v434_v4, %v430_v3  ;;  %v990_v3 = vld [vmem:[%s2431_s15 + $0x50] sm:$0xff] }
 0x10f   : > { %949 = vmatmul.bf16.gmra.mxu3 %v503_v13  ;;  %v509_v13 = vpack.c.bf16 %v433_v2, %v429_v1 }
 0x110   : > { %1052 = vadd.xlane.f32.xlu1 %v2548_v17 }
 0x111   : > { %v821_v18 = vpop.f32.mrf.mxu2  ;;  %v645_v21 = vpop.f32.mrf.mxu0 }
 0x112   : > { %v822_v19 = vadd.f32 %v821_v18, %v733_v16  ;;  %v910_v20 = vpop.f32.mrf.mxu3  ;;  %v734_v22 = vpop.f32.mrf.mxu1  ;;  %v646_v26 = vadd.f32 %v2504_v0, %v645_v21  ;;  %v511_v18 = vpack.c.bf16 %v435_v7, %v431_v6  ;;  %v444_v7 = vld [vmem:[%s2418_s1 + $0x380] sm:$0xff] }
 0x114   : > { %v911_v24 = vadd.f32 %v910_v20, %v822_v19  ;;  %v735_v34 = vadd.f32 %v734_v22, %v646_v26  ;;  %v987_v19 = vld [vmem:[%s2431_s15 + $0x38] sm:$0xff] }
 0x116   : > { %v2553_v27 = vadd.f32 %v984_v23, %v911_v24 }
 0x118   : > { %1054 = vadd.xlane.f32.xlu2 %v2553_v27 }
 0x119   : > { %v823_v37 = vpop.f32.mrf.mxu2  ;;  %v648_v41 = vpop.f32.mrf.mxu0 }
 0x11a   : > { %v824_v39 = vadd.f32 %v823_v37, %v735_v34  ;;  %v912_v40 = vpop.f32.mrf.mxu3  ;;  %v649_v44 = vadd.f32 %v2504_v0, %v648_v41  ;;  %v737_v45 = vpop.f32.mrf.mxu1  ;;  %v436_v34 = vld [vmem:[%s2418_s1 + $0x340] sm:$0xff]  ;;  %v441_v37 = vld [vmem:[%s2418_s1 + $0x368] sm:$0xff]  ;;  %v439_v41 = vld [vmem:[%s2418_s1 + $0x358] sm:$0xff] }
 0x11c   : > { %v913_v49 = vadd.f32 %v912_v40, %v824_v39  ;;  %687 = vmatmul.bf16.gmra.mxu0 %v504_v38  ;;  %v738_v50 = vadd.f32 %v737_v45, %v649_v44  ;;  %v438_v38 = vld [vmem:[%s2418_s1 + $0x350] sm:$0xff]  ;;  %v512_v44 = vpack.c.bf16 %v440_v35, %v436_v34  ;;  %v2251_v35 = vmov 128.0  }
 0x11d   : > { %776 = vmatmul.bf16.gmra.mxu1 %v505_v42  ;;  %v442_v39 = vld [vmem:[%s2418_s1 + $0x370] sm:$0xff]  ;;  %v443_v42 = vld [vmem:[%s2418_s1 + $0x378] sm:$0xff]  ;;  %2011 = vrcp.f32 %v2251_v35 }
 0x11e   : > { %865 = vmatmul.bf16.gmra.mxu2 %v506_v43  ;;  %v2566_v51 = vadd.f32 %v985_v47, %v913_v49  ;;  %v513_v49 = vpack.c.bf16 %v441_v37, %v437_v36 }
 0x11f   : > { %954 = vmatmul.bf16.gmra.mxu3 %v507_v46 }
 0x120   : > { %1056 = vadd.xlane.f32.xlu2 %v2566_v51 }
 0x121   : > { %v826_v52 = vpop.f32.mrf.mxu2  ;;  %v650_v55 = vpop.f32.mrf.mxu0 }
 0x122   : > { %v827_v53 = vadd.f32 %v826_v52, %v738_v50  ;;  %v915_v54 = vpop.f32.mrf.mxu3  ;;  %v739_v56 = vpop.f32.mrf.mxu1  ;;  %v651_v60 = vadd.f32 %v2504_v0, %v650_v55  ;;  %v514_v50 = vpack.c.bf16 %v442_v39, %v438_v38  ;;  %v989_v55 = vld [vmem:[%s2431_s15 + $0x48] sm:$0xff] }
 0x124   : > { %v916_v59 = vadd.f32 %v915_v54, %v827_v53  ;;  %v740_v5 = vadd.f32 %v739_v56, %v651_v60  ;;  %v515_v54 = vpack.c.bf16 %v443_v42, %v439_v41  ;;  %v992_v41 = vld [vmem:[%s2431_s15 + $0x60] sm:$0xff] }
 0x126   : > { %v2571_v61 = vadd.f32 %v986_v58, %v916_v59 }
 0x128   : > { %1058 = vadd.xlane.f32.xlu0 %v2571_v61 }
 0x129   : > { %v828_v8 = vpop.f32.mrf.mxu2  ;;  %v653_v12 = vpop.f32.mrf.mxu0 }
 0x12a   : > { %v829_v10 = vadd.f32 %v828_v8, %v740_v5  ;;  %v917_v11 = vpop.f32.mrf.mxu3  ;;  %v654_v15 = vadd.f32 %v2504_v0, %v653_v12  ;;  %v742_v16 = vpop.f32.mrf.mxu1  ;;  %v448_v8 = vld [vmem:[%s2418_s1 + $0x3a0] sm:$0xff]  ;;  %v450_v12 = vld [vmem:[%s2418_s1 + $0x3b0] sm:$0xff] }
 0x12c   : > { %v918_v20 = vadd.f32 %v917_v11, %v829_v10  ;;  %692 = vmatmul.bf16.gmra.mxu0 %v508_v9  ;;  %v743_v21 = vadd.f32 %v742_v16, %v654_v15  ;;  %v445_v9 = vld [vmem:[%s2418_s1 + $0x388] sm:$0xff]  ;;  %v446_v11 = vld [vmem:[%s2418_s1 + $0x390] sm:$0xff]  ;;  %v451_v15 = vld [vmem:[%s2418_s1 + $0x3b8] sm:$0xff] }
 0x12d   : > { %781 = vmatmul.bf16.gmra.mxu1 %v509_v13  ;;  %v449_v10 = vld [vmem:[%s2418_s1 + $0x3a8] sm:$0xff] }
 0x12e   : > { %870 = vmatmul.bf16.gmra.mxu2 %v510_v14  ;;  %v2584_v22 = vadd.f32 %v987_v19, %v918_v20  ;;  %v447_v14 = vld [vmem:[%s2418_s1 + $0x398] sm:$0xff] }
 0x12f   : > { %959 = vmatmul.bf16.gmra.mxu3 %v511_v18  ;;  %v516_v18 = vpack.c.bf16 %v448_v8, %v444_v7 }
 0x130   : > { %1060 = vadd.xlane.f32.xlu1 %v2584_v22 }
 0x131   : > { %v831_v23 = vpop.f32.mrf.mxu2  ;;  %v655_v28 = vpop.f32.mrf.mxu0 }
 0x132   : > { %v832_v24 = vadd.f32 %v831_v23, %v743_v21  ;;  %v920_v26 = vpop.f32.mrf.mxu3  ;;  %v744_v29 = vpop.f32.mrf.mxu1  ;;  %v656_v32 = vadd.f32 %v2504_v0, %v655_v28  ;;  %v517_v23 = vpack.c.bf16 %v449_v10, %v445_v9  ;;  %v993_v9 = vld [vmem:[%s2431_s15 + $0x68] sm:$0xff] }
 0x134   : > { %v921_v31 = vadd.f32 %v920_v26, %v832_v24  ;;  %v745_v40 = vadd.f32 %v744_v29, %v656_v32  ;;  %v518_v24 = vpack.c.bf16 %v450_v12, %v446_v11  ;;  %v519_v29 = vpack.c.bf16 %v451_v15, %v447_v14 }
 0x136   : > { %v2589_v33 = vadd.f32 %v988_v30, %v921_v31  ;;  %v991_v30 = vld [vmem:[%s2431_s15 + $0x58] sm:$0xff] }
 0x138   : > { %1062 = vadd.xlane.f32.xlu2 %v2589_v33 }
 0x139   : > { %v833_v43 = vpop.f32.mrf.mxu2  ;;  %v658_v47 = vpop.f32.mrf.mxu0 }
 0x13a   : > { %v834_v45 = vadd.f32 %v833_v43, %v745_v40  ;;  %v922_v46 = vpop.f32.mrf.mxu3  ;;  %v659_v52 = vadd.f32 %v2504_v0, %v658_v47  ;;  %v747_v53 = vpop.f32.mrf.mxu1  ;;  %v456_v47 = vld [vmem:[%s2418_s1 + $0x3e0] sm:$0xff] }
 0x13c   : > { %v923_v56 = vadd.f32 %v922_v46, %v834_v45  ;;  %697 = vmatmul.bf16.gmra.mxu0 %v512_v44  ;;  %v748_v58 = vadd.f32 %v747_v53, %v659_v52  ;;  %v2012_v44 = vpop.eup %2011  ;;  %v452_v46 = vld [vmem:[%s2418_s1 + $0x3c0] sm:$0xff]  ;;  %v454_v52 = vld [vmem:[%s2418_s1 + $0x3d0] sm:$0xff] }
 0x13d   : > { %786 = vmatmul.bf16.gmra.mxu1 %v513_v49  ;;  %v453_v49 = vld [vmem:[%s2418_s1 + $0x3c8] sm:$0xff]  ;;  %v458_v53 = vld [vmem:[%s2418_s1 + $0x3f0] sm:$0xff]  ;;  %vm1115_vm0 = vweird.f32 %v2012_v44 }
 0x13e   : > { %875 = vmatmul.bf16.gmra.mxu2 %v514_v50  ;;  %v2602_v59 = vadd.f32 %v989_v55, %v923_v56  ;;  %v457_v50 = vld [vmem:[%s2418_s1 + $0x3e8] sm:$0xff]  ;;  %v455_v55 = vld [vmem:[%s2418_s1 + $0x3d8] sm:$0xff] }
 0x13f   : > { %964 = vmatmul.bf16.gmra.mxu3 %v515_v54  ;;  %v459_v56 = vld [vmem:[%s2418_s1 + $0x3f8] sm:$0xff] }
 0x140   : > { %1064 = vadd.xlane.f32.xlu0 %v2602_v59  ;;  %v523_v8 = vpack.c.bf16 %v459_v56, %v455_v55  ;;  %v996_v56 = vld [vmem:[%s2431_s15 + $0x80] sm:$0xff] }
 0x141   : > { %v836_v60 = vpop.f32.mrf.mxu2  ;;  %v660_v1 = vpop.f32.mrf.mxu0 }
 0x142   : > { %v837_v62 = vadd.f32 %v836_v60, %v748_v58  ;;  %v925_v63 = vpop.f32.mrf.mxu3  ;;  %v749_v2 = vpop.f32.mrf.mxu1  ;;  %v661_v5 = vadd.f32 %v2504_v0, %v660_v1  ;;  %v520_v60 = vpack.c.bf16 %v456_v47, %v452_v46 }
 0x144   : > { %v926_v4 = vadd.f32 %v925_v63, %v837_v62  ;;  %v750_v13 = vadd.f32 %v749_v2, %v661_v5  ;;  %v1111_v62 = vmul.f32 128.0, %v2012_v44 }
 0x146   : > { %v2607_v6 = vadd.f32 %v990_v3, %v926_v4  ;;  %v521_v3 = vpack.c.bf16 %v457_v50, %v453_v49  ;;  %v522_v4 = vpack.c.bf16 %v458_v53, %v454_v52  ;;  %v1112_v11 = vsub.f32 1.0, %v1111_v62 }
 0x148   : > { %1066 = vadd.xlane.f32.xlu1 %v2607_v6  ;;  %v1113_v15 = vmul.f32 %v2012_v44, %v1112_v11 }
 0x149   : > { %v838_v16 = vpop.f32.mrf.mxu2  ;;  %v663_v21 = vpop.f32.mrf.mxu0 }
 0x14a   : > { %v839_v19 = vadd.f32 %v838_v16, %v750_v13  ;;  %v927_v20 = vpop.f32.mrf.mxu3  ;;  %v664_v26 = vadd.f32 %v2504_v0, %v663_v21  ;;  %v752_v28 = vpop.f32.mrf.mxu1  ;;  %v994_v21 = vld [vmem:[%s2431_s15 + $0x70] sm:$0xff] }
 0x14c   : > { %v928_v31 = vadd.f32 %v927_v20, %v839_v19  ;;  %702 = vmatmul.bf16.gmra.mxu0 %v516_v18  ;;  %v753_v32 = vadd.f32 %v752_v28, %v664_v26  ;;  %v1114_v26 = vadd.f32 %v2012_v44, %v1113_v15 }
 0x14d   : > { %791 = vmatmul.bf16.gmra.mxu1 %v517_v23 }
 0x14e   : > { %880 = vmatmul.bf16.gmra.mxu2 %v518_v24  ;;  %v2620_v34 = vadd.f32 %v991_v30, %v928_v31  ;;  %v2646_v31 = vsel %vm1115_vm0, %v2012_v44, %v1114_v26 }
 0x14f   : > { %969 = vmatmul.bf16.gmra.mxu3 %v519_v29 }
 0x150   : > { %1068 = vadd.xlane.f32.xlu2 %v2620_v34 }
 0x151   : > { %v841_v36 = vpop.f32.mrf.mxu2  ;;  %v665_v39 = vpop.f32.mrf.mxu0 }
 0x152   : > { %v842_v37 = vadd.f32 %v841_v36, %v753_v32  ;;  %v930_v38 = vpop.f32.mrf.mxu3  ;;  %v754_v40 = vpop.f32.mrf.mxu1  ;;  %v666_v43 = vadd.f32 %v2504_v0, %v665_v39 }
 0x154   : > { %v931_v42 = vadd.f32 %v930_v38, %v842_v37  ;;  %v755_v54 = vadd.f32 %v754_v40, %v666_v43  ;;  %v995_v40 = vld [vmem:[%s2431_s15 + $0x78] sm:$0xff] }
 0x156   : > { %v2625_v45 = vadd.f32 %v992_v41, %v931_v42 }
 0x158   : > { %1070 = vadd.xlane.f32.xlu0 %v2625_v45 }
 0x159   : > { %v843_v58 = vpop.f32.mrf.mxu2  ;;  %v668_v2 = vpop.f32.mrf.mxu0 }
 0x15a   : > { %v844_v63 = vadd.f32 %v843_v58, %v755_v54  ;;  %v932_v1 = vpop.f32.mrf.mxu3  ;;  %v669_v5 = vadd.f32 %v2504_v0, %v668_v2  ;;  %v757_v7 = vpop.f32.mrf.mxu1 }
 0x15c   : > { %v933_v10 = vadd.f32 %v932_v1, %v844_v63  ;;  %707 = vmatmul.bf16.gmra.mxu0 %v520_v60  ;;  %v758_v12 = vadd.f32 %v757_v7, %v669_v5 }
 0x15d   : > { %796 = vmatmul.bf16.gmra.mxu1 %v521_v3 }
 0x15e   : > { %885 = vmatmul.bf16.gmra.mxu2 %v522_v4  ;;  %v2638_v13 = vadd.f32 %v993_v9, %v933_v10 }
 0x15f   : > { %974 = vmatmul.bf16.gmra.mxu3 %v523_v8 }
 0x160   : > { %1072 = vadd.xlane.f32.xlu1 %v2638_v13 }
 0x161   : > { %v846_v14 = vpop.f32.mrf.mxu2  ;;  %v670_v19 = vpop.f32.mrf.mxu0 }
 0x162   : > { %v847_v16 = vadd.f32 %v846_v14, %v758_v12  ;;  %v935_v18 = vpop.f32.mrf.mxu3  ;;  %v759_v20 = vpop.f32.mrf.mxu1  ;;  %v671_v24 = vadd.f32 %v2504_v0, %v670_v19 }
 0x164   : > { %v936_v23 = vadd.f32 %v935_v18, %v847_v16  ;;  %v760_v29 = vadd.f32 %v759_v20, %v671_v24 }
 0x166   : > { %v2643_v28 = vadd.f32 %v994_v21, %v936_v23 }
 0x168   : > { %1074 = vadd.xlane.f32.xlu2 %v2643_v28 }
 0x169   : > { %v848_v30 = vpop.f32.mrf.mxu2  ;;  %v673_v36 = vpop.f32.mrf.mxu0 }
 0x16a   : > { %v849_v32 = vadd.f32 %v848_v30, %v760_v29  ;;  %v937_v35 = vpop.f32.mrf.mxu3  ;;  %v674_v37 = vadd.f32 %v2504_v0, %v673_v36  ;;  %v762_v38 = vpop.f32.mrf.mxu1  ;;  %v998_v29 = vld [vmem:[%s2431_s15 + $0x90] sm:$0xff] }
 0x16b   : > { %v1047_v39 = vpop.xlane.xlu0 %1046 }
 0x16c   : > { %v938_v41 = vadd.f32 %v937_v35, %v849_v32  ;;  %v1117_v42 = vmul.f32 %v2646_v31, %v1047_v39  ;;  %v763_v43 = vadd.f32 %v762_v38, %v674_v37 }
 0x16e   : > { %v2652_v46 = vsub.f32 %v2517_v25, %v1117_v42  ;;  %v2654_v47 = vadd.f32 %v995_v40, %v938_v41 }
 0x170   : > { %1076 = vadd.xlane.f32.xlu0 %v2654_v47  ;;  %v1181_v44 = vmul.f32 %v2652_v46, %v2652_v46 }
 0x171   : > { %v851_v49 = vpop.f32.mrf.mxu2  ;;  %v675_v53 = vpop.f32.mrf.mxu0 }
 0x172   : > { %v852_v50 = vadd.f32 %v851_v49, %v763_v43  ;;  %v940_v52 = vpop.f32.mrf.mxu3  ;;  %1213 = vadd.xlane.f32.xlu2 %v1181_v44  ;;  %v764_v54 = vpop.f32.mrf.mxu1  ;;  %v676_v25 = vadd.f32 %v2504_v0, %v675_v53 }
 0x173   : > { %v1049_v55 = vpop.xlane.xlu0 %1048 }
 0x174   : > { %v941_v58 = vadd.f32 %v940_v52, %v852_v50  ;;  %v1118_v60 = vmul.f32 %v2646_v31, %v1049_v55  ;;  %v765_v1 = vadd.f32 %v764_v54, %v676_v25 }
 0x176   : > { %v2663_v62 = vsub.f32 %v2530_v48, %v1118_v60  ;;  %v2665_v63 = vadd.f32 %v996_v56, %v941_v58  ;;  %v997_v48 = vld [vmem:[%s2431_s15 + $0x88] sm:$0xff] }
 0x178   : > { %1078 = vadd.xlane.f32.xlu1 %v2665_v63  ;;  %v1182_v2 = vmul.f32 %v2663_v62, %v2663_v62 }
 0x179   : > { %v853_v3 = vpop.f32.mrf.mxu2  ;;  %v678_v7 = vpop.f32.mrf.mxu0 }
 0x17a   : > { %v854_v4 = vadd.f32 %v853_v3, %v765_v1  ;;  %v942_v5 = vpop.f32.mrf.mxu3  ;;  %1215 = vadd.xlane.f32.xlu0 %v1182_v2  ;;  %v679_v8 = vadd.f32 %v2504_v0, %v678_v7  ;;  %v767_v9 = vpop.f32.mrf.mxu1 }
 0x17b   : > { %v1051_v10 = vpop.xlane.xlu1 %1050 }
 0x17c   : > { %v943_v11 = vadd.f32 %v942_v5, %v854_v4  ;;  %v1119_v12 = vmul.f32 %v2646_v31, %v1051_v10  ;;  %v768_v14 = vadd.f32 %v767_v9, %v679_v8  ;;  %v1000_v4 = vld [vmem:[%s2431_s15 + $0xa0] sm:$0xff] }
 0x17e   : > { %v2674_v15 = vsub.f32 %v2535_v57, %v1119_v12  ;;  %v2676_v16 = vadd.f32 %v997_v48, %v943_v11 }
 0x180   : > { %1080 = vadd.xlane.f32.xlu2 %v2676_v16  ;;  %v1183_v18 = vmul.f32 %v2674_v15, %v2674_v15 }
 0x181   : > { %v856_v19 = vpop.f32.mrf.mxu2  ;;  %v680_v23 = vpop.f32.mrf.mxu0 }
 0x182   : > { %v857_v20 = vadd.f32 %v856_v19, %v768_v14  ;;  %v945_v21 = vpop.f32.mrf.mxu3  ;;  %1217 = vadd.xlane.f32.xlu1 %v1183_v18  ;;  %v769_v24 = vpop.f32.mrf.mxu1  ;;  %v681_v57 = vadd.f32 %v2504_v0, %v680_v23 }
 0x183   : > { %v1053_v26 = vpop.xlane.xlu1 %1052 }
 0x184   : > { %v946_v30 = vadd.f32 %v945_v21, %v857_v20  ;;  %v1120_v32 = vmul.f32 %v2646_v31, %v1053_v26  ;;  %v770_v37 = vadd.f32 %v769_v24, %v681_v57 }
 0x186   : > { %v2685_v35 = vsub.f32 %v2548_v17, %v1120_v32  ;;  %v2687_v36 = vadd.f32 %v998_v29, %v946_v30  ;;  %v999_v17 = vld [vmem:[%s2431_s15 + $0x98] sm:$0xff] }
 0x188   : > { %1082 = vadd.xlane.f32.xlu0 %v2687_v36  ;;  %v1184_v38 = vmul.f32 %v2685_v35, %v2685_v35 }
 0x189   : > { %v858_v39 = vpop.f32.mrf.mxu2  ;;  %v683_v42 = vpop.f32.mrf.mxu0 }
 0x18a   : > { %v859_v40 = vadd.f32 %v858_v39, %v770_v37  ;;  %v947_v41 = vpop.f32.mrf.mxu3  ;;  %1219 = vadd.xlane.f32.xlu2 %v1184_v38  ;;  %v684_v43 = vadd.f32 %v2504_v0, %v683_v42  ;;  %v772_v44 = vpop.f32.mrf.mxu1  ;;  %v1002_v42 = vld [vmem:[%s2431_s15 + $0xb0] sm:$0xff] }
 0x18b   : > { %v1055_v49 = vpop.xlane.xlu2 %1054 }
 0x18c   : > { %v948_v50 = vadd.f32 %v947_v41, %v859_v40  ;;  %v1121_v52 = vmul.f32 %v2646_v31, %v1055_v49  ;;  %v773_v53 = vadd.f32 %v772_v44, %v684_v43 }
 0x18e   : > { %v2696_v54 = vsub.f32 %v2553_v27, %v1121_v52  ;;  %v2698_v55 = vadd.f32 %v999_v17, %v948_v50 }
 0x190   : > { %1084 = vadd.xlane.f32.xlu1 %v2698_v55  ;;  %v1185_v56 = vmul.f32 %v2696_v54, %v2696_v54 }
 0x191   : > { %v861_v58 = vpop.f32.mrf.mxu2  ;;  %v685_v1 = vpop.f32.mrf.mxu0 }
 0x192   : > { %v862_v25 = vadd.f32 %v861_v58, %v773_v53  ;;  %v950_v60 = vpop.f32.mrf.mxu3  ;;  %1221 = vadd.xlane.f32.xlu0 %v1185_v56  ;;  %v774_v2 = vpop.f32.mrf.mxu1  ;;  %v686_v27 = vadd.f32 %v2504_v0, %v685_v1 }
 0x193   : > { %v1057_v3 = vpop.xlane.xlu2 %1056 }
 0x194   : > { %v951_v5 = vadd.f32 %v950_v60, %v862_v25  ;;  %v1122_v7 = vmul.f32 %v2646_v31, %v1057_v3  ;;  %v775_v10 = vadd.f32 %v774_v2, %v686_v27 }
 0x196   : > { %v2707_v8 = vsub.f32 %v2566_v51, %v1122_v7  ;;  %v2709_v9 = vadd.f32 %v1000_v4, %v951_v5  ;;  %v1001_v51 = vld [vmem:[%s2431_s15 + $0xa8] sm:$0xff] }
 0x198   : > { %1086 = vadd.xlane.f32.xlu2 %v2709_v9  ;;  %v1186_v48 = vmul.f32 %v2707_v8, %v2707_v8 }
 0x199   : > { %v863_v11 = vpop.f32.mrf.mxu2  ;;  %v688_v18 = vpop.f32.mrf.mxu0 }
 0x19a   : > { %v864_v12 = vadd.f32 %v863_v11, %v775_v10  ;;  %v952_v14 = vpop.f32.mrf.mxu3  ;;  %1223 = vadd.xlane.f32.xlu1 %v1186_v48  ;;  %v689_v19 = vadd.f32 %v2504_v0, %v688_v18  ;;  %v777_v20 = vpop.f32.mrf.mxu1 }
 0x19b   : > { %v1059_v21 = vpop.xlane.xlu0 %1058 }
 0x19c   : > { %v953_v23 = vadd.f32 %v952_v14, %v864_v12  ;;  %v1123_v24 = vmul.f32 %v2646_v31, %v1059_v21  ;;  %v778_v26 = vadd.f32 %v777_v20, %v689_v19  ;;  %v1004_v20 = vld [vmem:[%s2431_s15 + $0xc0] sm:$0xff] }
 0x19e   : > { %v2718_v29 = vsub.f32 %v2571_v61, %v1123_v24  ;;  %v2720_v30 = vadd.f32 %v1001_v51, %v953_v23 }
 0x1a0   : > { %1088 = vadd.xlane.f32.xlu0 %v2720_v30  ;;  %v1187_v57 = vmul.f32 %v2718_v29, %v2718_v29 }
 0x1a1   : > { %v866_v32 = vpop.f32.mrf.mxu2  ;;  %v690_v39 = vpop.f32.mrf.mxu0 }
 0x1a2   : > { %v867_v37 = vadd.f32 %v866_v32, %v778_v26  ;;  %v955_v38 = vpop.f32.mrf.mxu3  ;;  %1225 = vadd.xlane.f32.xlu2 %v1187_v57  ;;  %v779_v40 = vpop.f32.mrf.mxu1  ;;  %v691_v61 = vadd.f32 %v2504_v0, %v690_v39 }
 0x1a3   : > { %v1061_v41 = vpop.xlane.xlu1 %1060 }
 0x1a4   : > { %v956_v43 = vadd.f32 %v955_v38, %v867_v37  ;;  %v1124_v44 = vmul.f32 %v2646_v31, %v1061_v41  ;;  %v780_v50 = vadd.f32 %v779_v40, %v691_v61 }
 0x1a6   : > { %v2729_v49 = vsub.f32 %v2584_v22, %v1124_v44  ;;  %v2731_v17 = vadd.f32 %v1002_v42, %v956_v43  ;;  %v1003_v22 = vld [vmem:[%s2431_s15 + $0xb8] sm:$0xff] }
 0x1a8   : > { %1090 = vadd.xlane.f32.xlu1 %v2731_v17  ;;  %v1188_v52 = vmul.f32 %v2729_v49, %v2729_v49 }
 0x1a9   : > { %v868_v53 = vpop.f32.mrf.mxu2  ;;  %v693_v25 = vpop.f32.mrf.mxu0 }
 0x1aa   : > { %v869_v56 = vadd.f32 %v868_v53, %v780_v50  ;;  %v957_v58 = vpop.f32.mrf.mxu3  ;;  %1227 = vadd.xlane.f32.xlu0 %v1188_v52  ;;  %v694_v60 = vadd.f32 %v2504_v0, %v693_v25  ;;  %v782_v1 = vpop.f32.mrf.mxu1 }
 0x1ab   : > { %v1063_v2 = vpop.xlane.xlu2 %1062 }
 0x1ac   : > { %v958_v3 = vadd.f32 %v957_v58, %v869_v56  ;;  %v1125_v4 = vmul.f32 %v2646_v31, %v1063_v2  ;;  %v783_v5 = vadd.f32 %v782_v1, %v694_v60 }
 0x1ae   : > { %v2740_v27 = vsub.f32 %v2589_v33, %v1125_v4  ;;  %v2742_v7 = vadd.f32 %v1003_v22, %v958_v3  ;;  %v1006_v22 = vld [vmem:[%s2431_s15 + $0xd0] sm:$0xff] }
 0x1b0   : > { %1092 = vadd.xlane.f32.xlu2 %v2742_v7  ;;  %v1189_v10 = vmul.f32 %v2740_v27, %v2740_v27 }
 0x1b1   : > { %v871_v48 = vpop.f32.mrf.mxu2  ;;  %v695_v14 = vpop.f32.mrf.mxu0 }
 0x1b2   : > { %v872_v11 = vadd.f32 %v871_v48, %v783_v5  ;;  %v960_v12 = vpop.f32.mrf.mxu3  ;;  %1229 = vadd.xlane.f32.xlu1 %v1189_v10  ;;  %v784_v18 = vpop.f32.mrf.mxu1  ;;  %v696_v33 = vadd.f32 %v2504_v0, %v695_v14 }
 0x1b3   : > { %v1065_v19 = vpop.xlane.xlu0 %1064 }
 0x1b4   : > { %v961_v21 = vadd.f32 %v960_v12, %v872_v11  ;;  %v1126_v51 = vmul.f32 %v2646_v31, %v1065_v19  ;;  %v785_v26 = vadd.f32 %v784_v18, %v696_v33 }
 0x1b6   : > { %v2751_v23 = vsub.f32 %v2602_v59, %v1126_v51  ;;  %v2753_v24 = vadd.f32 %v1004_v20, %v961_v21  ;;  %v1005_v59 = vld [vmem:[%s2431_s15 + $0xc8] sm:$0xff] }
 0x1b8   : > { %1094 = vadd.xlane.f32.xlu0 %v2753_v24  ;;  %v1190_v57 = vmul.f32 %v2751_v23, %v2751_v23 }
 0x1b9   : > { %v873_v32 = vpop.f32.mrf.mxu2  ;;  %v698_v39 = vpop.f32.mrf.mxu0 }
 0x1ba   : > { %v874_v37 = vadd.f32 %v873_v32, %v785_v26  ;;  %v962_v38 = vpop.f32.mrf.mxu3  ;;  %1231 = vadd.xlane.f32.xlu2 %v1190_v57  ;;  %v699_v40 = vadd.f32 %v2504_v0, %v698_v39  ;;  %v787_v41 = vpop.f32.mrf.mxu1 }
 0x1bb   : > { %v1067_v42 = vpop.xlane.xlu1 %1066 }
 0x1bc   : > { %v963_v43 = vadd.f32 %v962_v38, %v874_v37  ;;  %v1127_v61 = vmul.f32 %v2646_v31, %v1067_v42  ;;  %v788_v44 = vadd.f32 %v787_v41, %v699_v40 }
 0x1be   : > { %v2762_v50 = vsub.f32 %v2607_v6, %v1127_v61  ;;  %v2764_v52 = vadd.f32 %v1005_v59, %v963_v43  ;;  %v1008_v43 = vld [vmem:[%s2431_s15 + $0xe0] sm:$0xff] }
 0x1c0   : > { %1096 = vadd.xlane.f32.xlu1 %v2764_v52  ;;  %v1191_v53 = vmul.f32 %v2762_v50, %v2762_v50 }
 0x1c1   : > { %v876_v56 = vpop.f32.mrf.mxu2  ;;  %v700_v60 = vpop.f32.mrf.mxu0 }
 0x1c2   : > { %v877_v58 = vadd.f32 %v876_v56, %v788_v44  ;;  %v965_v25 = vpop.f32.mrf.mxu3  ;;  %1233 = vadd.xlane.f32.xlu0 %v1191_v53  ;;  %v789_v1 = vpop.f32.mrf.mxu1  ;;  %v701_v6 = vadd.f32 %v2504_v0, %v700_v60 }
 0x1c3   : > { %v1069_v2 = vpop.xlane.xlu2 %1068 }
 0x1c4   : > { %v966_v3 = vadd.f32 %v965_v25, %v877_v58  ;;  %v1128_v4 = vmul.f32 %v2646_v31, %v1069_v2  ;;  %v790_v48 = vadd.f32 %v789_v1, %v701_v6 }
 0x1c6   : > { %v2773_v5 = vsub.f32 %v2620_v34, %v1128_v4  ;;  %v2775_v10 = vadd.f32 %v1006_v22, %v966_v3  ;;  %v1007_v34 = vld [vmem:[%s2431_s15 + $0xd8] sm:$0xff]  ;;  %v1009_v4 = vld [vmem:[%s2431_s15 + $0xe8] sm:$0xff] }
 0x1c8   : > { %1098 = vadd.xlane.f32.xlu2 %v2775_v10  ;;  %v1192_v11 = vmul.f32 %v2773_v5, %v2773_v5 }
 0x1c9   : > { %v878_v12 = vpop.f32.mrf.mxu2  ;;  %v703_v19 = vpop.f32.mrf.mxu0 }
 0x1ca   : > { %v879_v14 = vadd.f32 %v878_v12, %v790_v48  ;;  %v967_v18 = vpop.f32.mrf.mxu3  ;;  %1235 = vadd.xlane.f32.xlu1 %v1192_v11  ;;  %v704_v20 = vadd.f32 %v2504_v0, %v703_v19  ;;  %v792_v21 = vpop.f32.mrf.mxu1 }
 0x1cb   : > { %v1071_v33 = vpop.xlane.xlu0 %1070 }
 0x1cc   : > { %v968_v51 = vadd.f32 %v967_v18, %v879_v14  ;;  %v1129_v26 = vmul.f32 %v2646_v31, %v1071_v33  ;;  %v793_v57 = vadd.f32 %v792_v21, %v704_v20 }
 0x1ce   : > { %v2784_v32 = vsub.f32 %v2625_v45, %v1129_v26  ;;  %v2786_v37 = vadd.f32 %v1007_v34, %v968_v51  ;;  %v2077_v45 = vld [vmem:[%s3144_s2] ss:$0 sm:$0xff]  ;;  %v1010_v34 = vld [vmem:[%s2431_s15 + $0xf0] sm:$0xff] }
 0x1d0   : > { %1100 = vadd.xlane.f32.xlu0 %v2786_v37  ;;  %v1193_v38 = vmul.f32 %v2784_v32, %v2784_v32 }
 0x1d1   : > { %v881_v39 = vpop.f32.mrf.mxu2  ;;  %v705_v41 = vpop.f32.mrf.mxu0 }
 0x1d2   : > { %v882_v0 = vadd.f32 %v881_v39, %v793_v57  ;;  %v970_v40 = vpop.f32.mrf.mxu3  ;;  %1237 = vadd.xlane.f32.xlu2 %v1193_v38  ;;  %v794_v42 = vpop.f32.mrf.mxu1  ;;  %v706_v44 = vadd.f32 %v2077_v45, %v705_v41 }
 0x1d3   : > { %v1073_v59 = vpop.xlane.xlu1 %1072 }
 0x1d4   : > { %v971_v61 = vadd.f32 %v970_v40, %v882_v0  ;;  %v1130_v53 = vmul.f32 %v2646_v31, %v1073_v59  ;;  %v795_v25 = vadd.f32 %v794_v42, %v706_v44 }
 0x1d6   : > { %v2797_v56 = vsub.f32 %v2638_v13, %v1130_v53  ;;  %v2799_v58 = vadd.f32 %v1008_v43, %v971_v61 }
 0x1d8   : > { %1102 = vadd.xlane.f32.xlu1 %v2799_v58  ;;  %v1194_v60 = vmul.f32 %v2797_v56, %v2797_v56 }
 0x1d9   : > { %v883_v1 = vpop.f32.mrf.mxu2  ;;  %v708_v3 = vpop.f32.mrf.mxu0 }
 0x1da   : > { %v884_v2 = vadd.f32 %v883_v1, %v795_v25  ;;  %v972_v22 = vpop.f32.mrf.mxu3  ;;  %1239 = vadd.xlane.f32.xlu0 %v1194_v60  ;;  %v709_v6 = vadd.f32 %v2077_v45, %v708_v3  ;;  %v797_v11 = vpop.f32.mrf.mxu1 }
 0x1db   : > { %v1075_v13 = vpop.xlane.xlu2 %1074 }
 0x1dc   : > { %v973_v48 = vadd.f32 %v972_v22, %v884_v2  ;;  %v798_v12 = vadd.f32 %v797_v11, %v709_v6  ;;  %v1131_v2 = vmul.f32 %v2646_v31, %v1075_v13 }
 0x1de   : > { %v2805_v14 = vadd.f32 %v1009_v4, %v973_v48 }
 0x1e0   : > { %1104 = vadd.xlane.f32.xlu2 %v2805_v14 }
 0x1e1   : > { %v886_v18 = vpop.f32.mrf.mxu2  ;;  %v710_v21 = vpop.f32.mrf.mxu0 }
 0x1e2   : > { %v887_v19 = vadd.f32 %v886_v18, %v798_v12  ;;  %v975_v20 = vpop.f32.mrf.mxu3  ;;  %v711_v26 = vadd.f32 %v2077_v45, %v710_v21  ;;  %v799_v41 = vpop.f32.mrf.mxu1  ;;  %v2832_v18 = vsub.f32 %v2643_v28, %v1131_v2 }
 0x1e3   : > { %v1077_v33 = vpop.xlane.xlu0 %1076 }
 0x1e4   : > { %v976_v51 = vadd.f32 %v975_v20, %v887_v19  ;;  %v1132_v57 = vmul.f32 %v2646_v31, %v1077_v33  ;;  %v800_v42 = vadd.f32 %v799_v41, %v711_v26 }
 0x1e5   : > { %v1214_v38 = vpop.xlane.xlu2 %1213 }
 0x1e6   : > { %v2811_v39 = vsub.f32 %v2654_v47, %v1132_v57  ;;  %v1277_v0 = vmul.f32 %v1214_v38, %v2646_v31  ;;  %v2814_v40 = vadd.f32 %v1010_v34, %v976_v51  ;;  %v1011_v47 = vld [vmem:[%s2431_s15 + $0xf8] sm:$0xff]  ;;  %v1195_v34 = vmul.f32 %v2832_v18, %v2832_v18  ;;  %s1808_s15 = sshll.u32 %s2865_s19, 4  ;;  %s1809_s15 = int_to_ptr.vmem [resolvable:$true] %s1808_s15 }
 0x1e8   : > { %v1309_v59 = vadd.f32 1e-12, %v1277_v0  ;;  %1106 = vadd.xlane.f32.xlu0 %v2814_v40  ;;  %v1196_v43 = vmul.f32 %v2811_v39, %v2811_v39  ;;  %v2841_v0 = vld [vmem:[%s3146_s4] ss:$0 sm:$0xff] }
 0x1e9   : > { %v888_v61 = vpop.f32.mrf.mxu2 }
 0x1ea   : > { %2013 = vrsqrt.f32 %v1309_v59  ;;  %v889_v45 = vadd.f32 %v888_v61, %v800_v42  ;;  %1243 = vadd.xlane.f32.xlu2 %v1196_v43  ;;  %v977_v44 = vpop.f32.mrf.mxu3  ;;  %vm1347_vm2 = vweird.f32 %v1309_v59 }
 0x1eb   : > { %v1079_v53 = vpop.xlane.xlu1 %1078 }
 0x1ec   : > { %v978_v25 = vadd.f32 %v977_v44, %v889_v45  ;;  %v1133_v60 = vmul.f32 %v2646_v31, %v1079_v53  ;;  %v2849_v45 = vld [vmem:[%s3147_s5] ss:$0 sm:$0xff] }
 0x1ed   : > { %v1216_v1 = vpop.xlane.xlu0 %1215 }
 0x1ee   : > { %v2823_v22 = vsub.f32 %v2665_v63, %v1133_v60  ;;  %v1278_v3 = vmul.f32 %v1216_v1, %v2646_v31  ;;  %v2826_v6 = vadd.f32 %v1011_v47, %v978_v25 }
 0x1f0   : > { %v2014_v4 = vpop.eup %2013  ;;  %v1310_v48 = vadd.f32 1e-12, %v1278_v3  ;;  %1108 = vadd.xlane.f32.xlu1 %v2826_v6  ;;  %v1197_v11 = vmul.f32 %v2823_v22, %v2823_v22 }
 0x1f1   : > { %v1342_v12 = vmul.f32 %v2014_v4, %v1309_v59  ;;  %vm1348_vm1 = vweird.f32 %v2014_v4 }
 0x1f2   : > { %2015 = vrsqrt.f32 %v1310_v48  ;;  %1245 = vadd.xlane.f32.xlu0 %v1197_v11  ;;  %vm1349_vm3 = vmor %vm1347_vm2, %vm1348_vm1  ;;  %vm1357_vm5 = vweird.f32 %v1310_v48 }
 0x1f3   : > { %v1343_v13 = vmul.f32 %v2014_v4, %v1342_v12  ;;  %v1081_v63 = vpop.xlane.xlu2 %1080 }
 0x1f4   : > { %v1134_v21 = vmul.f32 %v2646_v31, %v1081_v63 }
 0x1f5   : > { %v1344_v19 = vmul.f32 0.5, %v1343_v13  ;;  %v1218_v20 = vpop.xlane.xlu1 %1217 }
 0x1f6   : > { %v1279_v33 = vmul.f32 %v1218_v20, %v2646_v31  ;;  %v2844_v41 = vsub.f32 %v2676_v16, %v1134_v21 }
 0x1f7   : > { %v1345_v51 = vsub.f32 1.5, %v1344_v19 }
 0x1f8   : > { %v2016_v26 = vpop.eup %2015  ;;  %v1311_v57 = vadd.f32 1e-12, %v1279_v33  ;;  %1241 = vadd.xlane.f32.xlu1 %v1195_v34  ;;  %v1198_v1 = vmul.f32 %v2844_v41, %v2844_v41 }
 0x1f9   : > { %v1346_v28 = vmul.f32 %v2014_v4, %v1345_v51  ;;  %v1352_v38 = vmul.f32 %v2016_v26, %v1310_v48  ;;  %vm1358_vm4 = vweird.f32 %v2016_v26 }
 0x1fa   : > { %2017 = vrsqrt.f32 %v1311_v57  ;;  %vm1359_vm6 = vmor %vm1357_vm5, %vm1358_vm4  ;;  %vm1367_vm8 = vweird.f32 %v1311_v57 }
 0x1fb   : > { %v1350_v42 = vsel %vm1349_vm3, %v2014_v4, %v1346_v28  ;;  %v1353_v43 = vmul.f32 %v2016_v26, %v1352_v38  ;;  %v1083_v61 = vpop.xlane.xlu0 %1082 }
 0x1fc   : > { %v1661_v59 = vmul.f32 %v1350_v42, %v2652_v46  ;;  %v1135_v44 = vmul.f32 %v2646_v31, %v1083_v61 }
 0x1fd   : > { %v1354_v53 = vmul.f32 0.5, %v1353_v43  ;;  %v1220_v47 = vpop.xlane.xlu2 %1219 }
 0x1fe   : > { %v1696_v25 = vmul.f32 %v2841_v0, %v1661_v59  ;;  %v2855_v16 = vsub.f32 %v2687_v36, %v1135_v44  ;;  %v1280_v60 = vmul.f32 %v1220_v47, %v2646_v31 }
 0x1ff   : > { %v1355_v2 = vsub.f32 1.5, %v1354_v53 }
 0x200   : > { %v2018_v3 = vpop.eup %2017  ;;  %v1731_v46 = vadd.f32 %v2849_v45, %v1696_v25  ;;  %v1312_v4 = vadd.f32 1e-12, %v1280_v60  ;;  %1247 = vadd.xlane.f32.xlu1 %v1198_v1  ;;  %v1199_v11 = vmul.f32 %v2855_v16, %v2855_v16 }
 0x201   : > { %v1356_v12 = vmul.f32 %v2016_v26, %v1355_v2  ;;  %v1362_v13 = vmul.f32 %v2018_v3, %v1311_v57  ;;  %vm1368_vm7 = vweird.f32 %v2018_v3 }
 0x202   : > { %1763 = vst [vmem:[%s2865_s19] sm:$0xff] %v1731_v46  ;;  %2019 = vrsqrt.f32 %v1312_v4  ;;  %1249 = vadd.xlane.f32.xlu2 %v1199_v11  ;;  %vm1369_vm9 = vmor %vm1367_vm8, %vm1368_vm7  ;;  %vm1377_vm11 = vweird.f32 %v1312_v4 }
 0x203   : > { %v1360_v36 = vsel %vm1359_vm6, %v2016_v26, %v1356_v12  ;;  %v1363_v63 = vmul.f32 %v2018_v3, %v1362_v13  ;;  %v1085_v19 = vpop.xlane.xlu1 %1084 }
 0x204   : > { %v1662_v20 = vmul.f32 %v1360_v36, %v2663_v62  ;;  %v1136_v21 = vmul.f32 %v2646_v31, %v1085_v19 }
 0x205   : > { %v1364_v33 = vmul.f32 0.5, %v1363_v63  ;;  %v1222_v34 = vpop.xlane.xlu0 %1221 }
 0x206   : > { %v1697_v48 = vmul.f32 %v2841_v0, %v1662_v20  ;;  %v2872_v51 = vsub.f32 %v2698_v55, %v1136_v21  ;;  %v1281_v28 = vmul.f32 %v1222_v34, %v2646_v31 }
 0x207   : > { %v1365_v38 = vsub.f32 1.5, %v1364_v33 }
 0x208   : > { %v2020_v42 = vpop.eup %2019  ;;  %v1732_v26 = vadd.f32 %v2849_v45, %v1697_v48  ;;  %v1313_v43 = vadd.f32 1e-12, %v1281_v28  ;;  %v1200_v62 = vmul.f32 %v2872_v51, %v2872_v51 }
 0x209   : > { %v1366_v61 = vmul.f32 %v2018_v3, %v1365_v38  ;;  %v1372_v59 = vmul.f32 %v2020_v42, %v1312_v4  ;;  %vm1378_vm10 = vweird.f32 %v2020_v42 }
 0x20a   : > { %1764 = vst [vmem:[%s2865_s19 + $0x8] sm:$0xff] %v1732_v26  ;;  %2021 = vrsqrt.f32 %v1313_v43  ;;  %1251 = vadd.xlane.f32.xlu0 %v1200_v62  ;;  %vm1379_vm12 = vmor %vm1377_vm11, %vm1378_vm10  ;;  %vm1387_vm14 = vweird.f32 %v1313_v43 }
 0x20b   : > { %v1370_v55 = vsel %vm1369_vm9, %v2018_v3, %v1366_v61  ;;  %v1373_v44 = vmul.f32 %v2020_v42, %v1372_v59  ;;  %v1087_v53 = vpop.xlane.xlu2 %1086 }
 0x20c   : > { %v1663_v47 = vmul.f32 %v1370_v55, %v2674_v15  ;;  %v1137_v25 = vmul.f32 %v2646_v31, %v1087_v53 }
 0x20d   : > { %v1374_v60 = vmul.f32 0.5, %v1373_v44  ;;  %v1224_v1 = vpop.xlane.xlu1 %1223 }
 0x20e   : > { %v1698_v2 = vmul.f32 %v2841_v0, %v1663_v47  ;;  %v2883_v46 = vsub.f32 %v2709_v9, %v1137_v25  ;;  %v1282_v57 = vmul.f32 %v1224_v1, %v2646_v31 }
 0x20f   : > { %v1375_v11 = vsub.f32 1.5, %v1374_v60 }
 0x210   : > { %v2022_v12 = vpop.eup %2021  ;;  %v1733_v3 = vadd.f32 %v2849_v45, %v1698_v2  ;;  %v1314_v13 = vadd.f32 1e-12, %v1282_v57  ;;  %v1201_v15 = vmul.f32 %v2883_v46, %v2883_v46 }
 0x211   : > { %v1376_v36 = vmul.f32 %v2020_v42, %v1375_v11  ;;  %v1382_v63 = vmul.f32 %v2022_v12, %v1313_v43  ;;  %vm1388_vm13 = vweird.f32 %v2022_v12 }
 0x212   : > { %1765 = vst [vmem:[%s2865_s19 + $0x10] sm:$0xff] %v1733_v3  ;;  %2023 = vrsqrt.f32 %v1314_v13  ;;  %1253 = vadd.xlane.f32.xlu1 %v1201_v15  ;;  %vm1389_vm15 = vmor %vm1387_vm14, %vm1388_vm13  ;;  %vm1397_vm1 = vweird.f32 %v1314_v13 }
 0x213   : > { %v1380_v9 = vsel %vm1379_vm12, %v2020_v42, %v1376_v36  ;;  %v1383_v19 = vmul.f32 %v2022_v12, %v1382_v63  ;;  %v1089_v20 = vpop.xlane.xlu0 %1088 }
 0x214   : > { %v1664_v21 = vmul.f32 %v1380_v9, %v2685_v35  ;;  %v1138_v33 = vmul.f32 %v2646_v31, %v1089_v20 }
 0x215   : > { %v1384_v34 = vmul.f32 0.5, %v1383_v19  ;;  %v1226_v48 = vpop.xlane.xlu2 %1225 }
 0x216   : > { %v1699_v28 = vmul.f32 %v2841_v0, %v1664_v21  ;;  %v2894_v38 = vsub.f32 %v2720_v30, %v1138_v33  ;;  %v1283_v4 = vmul.f32 %v1226_v48, %v2646_v31 }
 0x217   : > { %v1385_v26 = vsub.f32 1.5, %v1384_v34 }
 0x218   : > { %v2024_v62 = vpop.eup %2023  ;;  %v1734_v42 = vadd.f32 %v2849_v45, %v1699_v28  ;;  %v1315_v61 = vadd.f32 1e-12, %v1283_v4  ;;  %v1202_v35 = vmul.f32 %v2894_v38, %v2894_v38 }
 0x219   : > { %v1386_v59 = vmul.f32 %v2022_v12, %v1385_v26  ;;  %v1392_v55 = vmul.f32 %v2024_v62, %v1314_v13  ;;  %vm1398_vm0 = vweird.f32 %v2024_v62 }
 0x21a   : > { %1766 = vst [vmem:[%s2865_s19 + $0x18] sm:$0xff] %v1734_v42  ;;  %2025 = vrsqrt.f32 %v1315_v61  ;;  %1255 = vadd.xlane.f32.xlu2 %v1202_v35  ;;  %vm1399_vm2 = vmor %vm1397_vm1, %vm1398_vm0  ;;  %vm1407_vm4 = vweird.f32 %v1315_v61 }
 0x21b   : > { %v1390_v30 = vsel %vm1389_vm15, %v2022_v12, %v1386_v59  ;;  %v1393_v44 = vmul.f32 %v2024_v62, %v1392_v55  ;;  %v1091_v53 = vpop.xlane.xlu1 %1090 }
 0x21c   : > { %v1665_v47 = vmul.f32 %v1390_v30, %v2696_v54  ;;  %v1139_v25 = vmul.f32 %v2646_v31, %v1091_v53 }
 0x21d   : > { %v1394_v60 = vmul.f32 0.5, %v1393_v44  ;;  %v1228_v1 = vpop.xlane.xlu0 %1227 }
 0x21e   : > { %v1700_v2 = vmul.f32 %v2841_v0, %v1665_v47  ;;  %v2905_v57 = vsub.f32 %v2731_v17, %v1139_v25  ;;  %v1284_v43 = vmul.f32 %v1228_v1, %v2646_v31 }
 0x21f   : > { %v1395_v11 = vsub.f32 1.5, %v1394_v60 }
 0x220   : > { %v2026_v3 = vpop.eup %2025  ;;  %v1735_v12 = vadd.f32 %v2849_v45, %v1700_v2  ;;  %v1316_v15 = vadd.f32 1e-12, %v1284_v43  ;;  %v1203_v54 = vmul.f32 %v2905_v57, %v2905_v57 }
 0x221   : > { %v1396_v36 = vmul.f32 %v2024_v62, %v1395_v11  ;;  %v1402_v63 = vmul.f32 %v2026_v3, %v1315_v61  ;;  %vm1408_vm3 = vweird.f32 %v2026_v3 }
 0x222   : > { %1767 = vst [vmem:[%s2865_s19 + $0x20] sm:$0xff] %v1735_v12  ;;  %2027 = vrsqrt.f32 %v1316_v15  ;;  %1257 = vadd.xlane.f32.xlu0 %v1203_v54  ;;  %vm1409_vm5 = vmor %vm1407_vm4, %vm1408_vm3  ;;  %vm1417_vm7 = vweird.f32 %v1316_v15 }
 0x223   : > { %v1400_v17 = vsel %vm1399_vm2, %v2024_v62, %v1396_v36  ;;  %v1403_v9 = vmul.f32 %v2026_v3, %v1402_v63  ;;  %v1093_v19 = vpop.xlane.xlu2 %1092 }
 0x224   : > { %v1666_v20 = vmul.f32 %v1400_v17, %v2707_v8  ;;  %v1140_v21 = vmul.f32 %v2646_v31, %v1093_v19 }
 0x225   : > { %v1404_v33 = vmul.f32 0.5, %v1403_v9  ;;  %v1230_v34 = vpop.xlane.xlu1 %1229 }
 0x226   : > { %v1701_v48 = vmul.f32 %v2841_v0, %v1666_v20  ;;  %v2916_v28 = vsub.f32 %v2742_v7, %v1140_v21  ;;  %v1285_v13 = vmul.f32 %v1230_v34, %v2646_v31 }
 0x227   : > { %v1405_v4 = vsub.f32 1.5, %v1404_v33 }
 0x228   : > { %v2028_v26 = vpop.eup %2027  ;;  %v1736_v62 = vadd.f32 %v2849_v45, %v1701_v48  ;;  %v1317_v42 = vadd.f32 1e-12, %v1285_v13  ;;  %v1204_v8 = vmul.f32 %v2916_v28, %v2916_v28 }
 0x229   : > { %v1406_v35 = vmul.f32 %v2026_v3, %v1405_v4  ;;  %v1412_v59 = vmul.f32 %v2028_v26, %v1316_v15  ;;  %vm1418_vm6 = vweird.f32 %v2028_v26 }
 0x22a   : > { %1768 = vst [vmem:[%s2865_s19 + $0x28] sm:$0xff] %v1736_v62  ;;  %2029 = vrsqrt.f32 %v1317_v42  ;;  %1259 = vadd.xlane.f32.xlu1 %v1204_v8  ;;  %vm1419_vm8 = vmor %vm1417_vm7, %vm1418_vm6  ;;  %vm1427_vm10 = vweird.f32 %v1317_v42 }
 0x22b   : > { %v1410_v7 = vsel %vm1409_vm5, %v2026_v3, %v1406_v35  ;;  %v1413_v55 = vmul.f32 %v2028_v26, %v1412_v59  ;;  %v1095_v30 = vpop.xlane.xlu0 %1094 }
 0x22c   : > { %v1667_v44 = vmul.f32 %v1410_v7, %v2718_v29  ;;  %v1141_v53 = vmul.f32 %v2646_v31, %v1095_v30 }
 0x22d   : > { %v1414_v47 = vmul.f32 0.5, %v1413_v55  ;;  %v1232_v25 = vpop.xlane.xlu2 %1231 }
 0x22e   : > { %v1702_v60 = vmul.f32 %v2841_v0, %v1667_v44  ;;  %v2927_v1 = vsub.f32 %v2753_v24, %v1141_v53  ;;  %v1286_v61 = vmul.f32 %v1232_v25, %v2646_v31 }
 0x22f   : > { %v1415_v2 = vsub.f32 1.5, %v1414_v47 }
 0x230   : > { %v2030_v43 = vpop.eup %2029  ;;  %v1737_v11 = vadd.f32 %v2849_v45, %v1702_v60  ;;  %v1318_v3 = vadd.f32 1e-12, %v1286_v61  ;;  %v1205_v29 = vmul.f32 %v2927_v1, %v2927_v1 }
 0x231   : > { %v1416_v12 = vmul.f32 %v2028_v26, %v1415_v2  ;;  %v1422_v54 = vmul.f32 %v2030_v43, %v1317_v42  ;;  %vm1428_vm9 = vweird.f32 %v2030_v43 }
 0x232   : > { %1769 = vst [vmem:[%s2865_s19 + $0x30] sm:$0xff] %v1737_v11  ;;  %2031 = vrsqrt.f32 %v1318_v3  ;;  %1261 = vadd.xlane.f32.xlu2 %v1205_v29  ;;  %vm1429_vm11 = vmor %vm1427_vm10, %vm1428_vm9  ;;  %vm1437_vm13 = vweird.f32 %v1318_v3 }
 0x233   : > { %v1420_v24 = vsel %vm1419_vm8, %v2028_v26, %v1416_v12  ;;  %v1423_v36 = vmul.f32 %v2030_v43, %v1422_v54  ;;  %v1097_v63 = vpop.xlane.xlu1 %1096 }
 0x234   : > { %v1668_v17 = vmul.f32 %v1420_v24, %v2729_v49  ;;  %v1142_v9 = vmul.f32 %v2646_v31, %v1097_v63 }
 0x235   : > { %v1424_v19 = vmul.f32 0.5, %v1423_v36  ;;  %v1234_v20 = vpop.xlane.xlu0 %1233 }
 0x236   : > { %v1703_v21 = vmul.f32 %v2841_v0, %v1668_v17  ;;  %v2938_v33 = vsub.f32 %v2764_v52, %v1142_v9  ;;  %v1287_v15 = vmul.f32 %v1234_v20, %v2646_v31 }
 0x237   : > { %v1425_v34 = vsub.f32 1.5, %v1424_v19 }
 0x238   : > { %v2032_v48 = vpop.eup %2031  ;;  %v1738_v13 = vadd.f32 %v2849_v45, %v1703_v21  ;;  %v1319_v4 = vadd.f32 1e-12, %v1287_v15  ;;  %v1206_v49 = vmul.f32 %v2938_v33, %v2938_v33 }
 0x239   : > { %v1426_v26 = vmul.f32 %v2030_v43, %v1425_v34  ;;  %v1432_v62 = vmul.f32 %v2032_v48, %v1318_v3  ;;  %vm1438_vm12 = vweird.f32 %v2032_v48 }
 0x23a   : > { %1770 = vst [vmem:[%s2865_s19 + $0x38] sm:$0xff] %v1738_v13  ;;  %2033 = vrsqrt.f32 %v1319_v4  ;;  %1263 = vadd.xlane.f32.xlu0 %v1206_v49  ;;  %vm1439_vm14 = vmor %vm1437_vm13, %vm1438_vm12  ;;  %vm1447_vm0 = vweird.f32 %v1319_v4 }
 0x23b   : > { %v1430_v52 = vsel %vm1429_vm11, %v2030_v43, %v1426_v26  ;;  %v1433_v8 = vmul.f32 %v2032_v48, %v1432_v62  ;;  %v1099_v35 = vpop.xlane.xlu2 %1098 }
 0x23c   : > { %v1669_v59 = vmul.f32 %v1430_v52, %v2740_v27  ;;  %v1143_v7 = vmul.f32 %v2646_v31, %v1099_v35 }
 0x23d   : > { %v1434_v55 = vmul.f32 0.5, %v1433_v8  ;;  %v1236_v30 = vpop.xlane.xlu1 %1235 }
 0x23e   : > { %v1704_v44 = vmul.f32 %v2841_v0, %v1669_v59  ;;  %v2949_v53 = vsub.f32 %v2775_v10, %v1143_v7  ;;  %v1288_v42 = vmul.f32 %v1236_v30, %v2646_v31 }
 0x23f   : > { %v1435_v47 = vsub.f32 1.5, %v1434_v55 }
 0x240   : > { %v2034_v25 = vpop.eup %2033  ;;  %v1739_v60 = vadd.f32 %v2849_v45, %v1704_v44  ;;  %v1320_v61 = vadd.f32 1e-12, %v1288_v42  ;;  %v1207_v27 = vmul.f32 %v2949_v53, %v2949_v53 }
 0x241   : > { %v1436_v2 = vmul.f32 %v2032_v48, %v1435_v47  ;;  %v1442_v43 = vmul.f32 %v2034_v25, %v1319_v4  ;;  %vm1448_vm15 = vweird.f32 %v2034_v25 }
 0x242   : > { %1771 = vst [vmem:[%s2865_s19 + $0x40] sm:$0xff] %v1739_v60  ;;  %2035 = vrsqrt.f32 %v1320_v61  ;;  %1265 = vadd.xlane.f32.xlu1 %v1207_v27  ;;  %vm1449_vm1 = vmor %vm1447_vm0, %vm1448_vm15  ;;  %vm1457_vm3 = vweird.f32 %v1320_v61 }
 0x243   : > { %v1440_v10 = vsel %vm1439_vm14, %v2032_v48, %v1436_v2  ;;  %v1443_v11 = vmul.f32 %v2034_v25, %v1442_v43  ;;  %v1101_v29 = vpop.xlane.xlu0 %1100 }
 0x244   : > { %v1670_v12 = vmul.f32 %v1440_v10, %v2751_v23  ;;  %v1144_v54 = vmul.f32 %v2646_v31, %v1101_v29 }
 0x245   : > { %v1444_v24 = vmul.f32 0.5, %v1443_v11  ;;  %v1238_v36 = vpop.xlane.xlu2 %1237 }
 0x246   : > { %v1705_v63 = vmul.f32 %v2841_v0, %v1670_v12  ;;  %v2960_v17 = vsub.f32 %v2786_v37, %v1144_v54  ;;  %v1289_v3 = vmul.f32 %v1238_v36, %v2646_v31 }
 0x247   : > { %v1445_v9 = vsub.f32 1.5, %v1444_v24 }
 0x248   : > { %v2036_v19 = vpop.eup %2035  ;;  %v1740_v20 = vadd.f32 %v2849_v45, %v1705_v63  ;;  %v1321_v21 = vadd.f32 1e-12, %v1289_v3  ;;  %v1208_v23 = vmul.f32 %v2960_v17, %v2960_v17 }
 0x249   : > { %v1446_v15 = vmul.f32 %v2034_v25, %v1445_v9  ;;  %v1452_v34 = vmul.f32 %v2036_v19, %v1320_v61  ;;  %vm1458_vm2 = vweird.f32 %v2036_v19 }
 0x24a   : > { %1772 = vst [vmem:[%s2865_s19 + $0x48] sm:$0xff] %v1740_v20  ;;  %2037 = vrsqrt.f32 %v1321_v21  ;;  %1267 = vadd.xlane.f32.xlu2 %v1208_v23  ;;  %vm1459_vm4 = vmor %vm1457_vm3, %vm1458_vm2  ;;  %vm1467_vm6 = vweird.f32 %v1321_v21 }
 0x24b   : > { %v1450_v37 = vsel %vm1449_vm1, %v2034_v25, %v1446_v15  ;;  %v1453_v48 = vmul.f32 %v2036_v19, %v1452_v34  ;;  %v1103_v13 = vpop.xlane.xlu1 %1102 }
 0x24c   : > { %v1671_v49 = vmul.f32 %v1450_v37, %v2762_v50  ;;  %v1145_v26 = vmul.f32 %v2646_v31, %v1103_v13 }
 0x24d   : > { %v1454_v62 = vmul.f32 0.5, %v1453_v48  ;;  %v1240_v52 = vpop.xlane.xlu0 %1239 }
 0x24e   : > { %v1706_v8 = vmul.f32 %v2841_v0, %v1671_v49  ;;  %v2971_v35 = vsub.f32 %v2799_v58, %v1145_v26  ;;  %v1290_v4 = vmul.f32 %v1240_v52, %v2646_v31 }
 0x24f   : > { %v1455_v59 = vsub.f32 1.5, %v1454_v62 }
 0x250   : > { %v2038_v7 = vpop.eup %2037  ;;  %v1741_v55 = vadd.f32 %v2849_v45, %v1706_v8  ;;  %v1322_v30 = vadd.f32 1e-12, %v1290_v4  ;;  %v1209_v50 = vmul.f32 %v2971_v35, %v2971_v35 }
 0x251   : > { %v1456_v44 = vmul.f32 %v2036_v19, %v1455_v59  ;;  %v1462_v42 = vmul.f32 %v2038_v7, %v1321_v21  ;;  %vm1468_vm5 = vweird.f32 %v2038_v7 }
 0x252   : > { %1773 = vst [vmem:[%s2865_s19 + $0x50] sm:$0xff] %v1741_v55  ;;  %2039 = vrsqrt.f32 %v1322_v30  ;;  %1269 = vadd.xlane.f32.xlu0 %v1209_v50  ;;  %vm1469_vm7 = vmor %vm1467_vm6, %vm1468_vm5  ;;  %vm1477_vm9 = vweird.f32 %v1322_v30 }
 0x253   : > { %v1460_v58 = vsel %vm1459_vm4, %v2036_v19, %v1456_v44  ;;  %v1463_v47 = vmul.f32 %v2038_v7, %v1462_v42  ;;  %v1105_v25 = vpop.xlane.xlu2 %1104 }
 0x254   : > { %v1672_v60 = vmul.f32 %v1460_v58, %v2773_v5  ;;  %v1146_v27 = vmul.f32 %v2646_v31, %v1105_v25 }
 0x255   : > { %v1464_v2 = vmul.f32 0.5, %v1463_v47 }
 0x256   : > { %v1707_v43 = vmul.f32 %v2841_v0, %v1672_v60  ;;  %v2982_v10 = vsub.f32 %v2805_v14, %v1146_v27 }
 0x257   : > { %v1465_v61 = vsub.f32 1.5, %v1464_v2 }
 0x258   : > { %v2040_v11 = vpop.eup %2039  ;;  %v1742_v29 = vadd.f32 %v2849_v45, %v1707_v43  ;;  %v1210_v12 = vmul.f32 %v2982_v10, %v2982_v10 }
 0x259   : > { %v1466_v54 = vmul.f32 %v2038_v7, %v1465_v61  ;;  %v1472_v24 = vmul.f32 %v2040_v11, %v1322_v30  ;;  %vm1478_vm8 = vweird.f32 %v2040_v11 }
 0x25a   : > { %1774 = vst [vmem:[%s2865_s19 + $0x58] sm:$0xff] %v1742_v29  ;;  %1271 = vadd.xlane.f32.xlu1 %v1210_v12  ;;  %vm1479_vm10 = vmor %vm1477_vm9, %vm1478_vm8 }
 0x25b   : > { %v1470_v5 = vsel %vm1469_vm7, %v2038_v7, %v1466_v54  ;;  %v1473_v36 = vmul.f32 %v2040_v11, %v1472_v24  ;;  %v1107_v63 = vpop.xlane.xlu0 %1106 }
 0x25c   : > { %v1673_v14 = vmul.f32 %v1470_v5, %v2784_v32  ;;  %v1147_v3 = vmul.f32 %v2646_v31, %v1107_v63 }
 0x25d   : > { %v1474_v9 = vmul.f32 0.5, %v1473_v36  ;;  %v1244_v19 = vpop.xlane.xlu2 %1243 }
 0x25e   : > { %v1708_v20 = vmul.f32 %v2841_v0, %v1673_v14  ;;  %v2992_v23 = vsub.f32 %v2814_v40, %v1147_v3  ;;  %v1292_v21 = vmul.f32 %v1244_v19, %v2646_v31 }
 0x25f   : > { %v1475_v15 = vsub.f32 1.5, %v1474_v9 }
 0x260   : > { %v1743_v34 = vadd.f32 %v2849_v45, %v1708_v20  ;;  %v1324_v37 = vadd.f32 1e-12, %v1292_v21  ;;  %v1211_v48 = vmul.f32 %v2992_v23, %v2992_v23 }
 0x261   : > { %v1476_v32 = vmul.f32 %v2040_v11, %v1475_v15 }
 0x262   : > { %1775 = vst [vmem:[%s2865_s19 + $0x60] sm:$0xff] %v1743_v34  ;;  %2041 = vrsqrt.f32 %v1324_v37  ;;  %1273 = vadd.xlane.f32.xlu2 %v1211_v48  ;;  %vm1497_vm12 = vweird.f32 %v1324_v37 }
 0x263   : > { %v1480_v13 = vsel %vm1479_vm10, %v2040_v11, %v1476_v32  ;;  %v1109_v40 = vpop.xlane.xlu1 %1108 }
 0x264   : > { %v1674_v49 = vmul.f32 %v1480_v13, %v2797_v56  ;;  %v1148_v26 = vmul.f32 %v2646_v31, %v1109_v40 }
 0x265   : > { %v1246_v62 = vpop.xlane.xlu0 %1245 }
 0x266   : > { %v1709_v52 = vmul.f32 %v2841_v0, %v1674_v49  ;;  %v3003_v8 = vsub.f32 %v2826_v6, %v1148_v26  ;;  %v1293_v4 = vmul.f32 %v1246_v62, %v2646_v31 }
 0x268   : > { %v2042_v59 = vpop.eup %2041  ;;  %v1744_v7 = vadd.f32 %v2849_v45, %v1709_v52  ;;  %v1325_v55 = vadd.f32 1e-12, %v1293_v4  ;;  %v1212_v30 = vmul.f32 %v3003_v8, %v3003_v8 }
 0x269   : > { %v1492_v50 = vmul.f32 %v2042_v59, %v1324_v37  ;;  %vm1498_vm11 = vweird.f32 %v2042_v59 }
 0x26a   : > { %1776 = vst [vmem:[%s2865_s19 + $0x68] sm:$0xff] %v1744_v7  ;;  %2043 = vrsqrt.f32 %v1325_v55  ;;  %1275 = vadd.xlane.f32.xlu0 %v1212_v30  ;;  %vm1499_vm13 = vmor %vm1497_vm12, %vm1498_vm11  ;;  %vm1507_vm15 = vweird.f32 %v1325_v55 }
 0x26b   : > { %v1493_v56 = vmul.f32 %v2042_v59, %v1492_v50  ;;  %v1242_v44 = vpop.xlane.xlu1 %1241 }
 0x26c   : > { %v1291_v42 = vmul.f32 %v1242_v44, %v2646_v31 }
 0x26d   : > { %v1494_v58 = vmul.f32 0.5, %v1493_v56 }
 0x26e   : > { %v1323_v6 = vadd.f32 1e-12, %v1291_v42 }
 0x26f   : > { %v1495_v47 = vsub.f32 1.5, %v1494_v58 }
 0x270   : > { %v2044_v25 = vpop.eup %2043  ;;  %2045 = vrsqrt.f32 %v1323_v6  ;;  %vm1487_vm2 = vweird.f32 %v1323_v6 }
 0x271   : > { %v1496_v60 = vmul.f32 %v2042_v59, %v1495_v47  ;;  %v1502_v27 = vmul.f32 %v2044_v25, %v1325_v55  ;;  %vm1508_vm14 = vweird.f32 %v2044_v25 }
 0x272   : > { %vm1509_vm0 = vmor %vm1507_vm15, %vm1508_vm14 }
 0x273   : > { %v1500_v2 = vsel %vm1499_vm13, %v2042_v59, %v1496_v60  ;;  %v1503_v43 = vmul.f32 %v2044_v25, %v1502_v27  ;;  %v1248_v61 = vpop.xlane.xlu1 %1247 }
 0x274   : > { %v1676_v11 = vmul.f32 %v1500_v2, %v2811_v39  ;;  %v1294_v29 = vmul.f32 %v1248_v61, %v2646_v31 }
 0x275   : > { %v1504_v12 = vmul.f32 0.5, %v1503_v43  ;;  %v1250_v54 = vpop.xlane.xlu2 %1249 }
 0x276   : > { %v2046_v24 = vpop.eup %2045  ;;  %v1711_v5 = vmul.f32 %v2841_v0, %v1676_v11  ;;  %v1326_v36 = vadd.f32 1e-12, %v1294_v29  ;;  %v1295_v63 = vmul.f32 %v1250_v54, %v2646_v31 }
 0x277   : > { %v1505_v14 = vsub.f32 1.5, %v1504_v12  ;;  %v1482_v3 = vmul.f32 %v2046_v24, %v1323_v6  ;;  %vm1488_vm1 = vweird.f32 %v2046_v24 }
 0x278   : > { %v1746_v9 = vadd.f32 %v2849_v45, %v1711_v5  ;;  %2047 = vrsqrt.f32 %v1326_v36  ;;  %v1327_v19 = vadd.f32 1e-12, %v1295_v63  ;;  %vm1489_vm3 = vmor %vm1487_vm2, %vm1488_vm1  ;;  %vm1517_vm5 = vweird.f32 %v1326_v36 }
 0x279   : > { %v1506_v20 = vmul.f32 %v2044_v25, %v1505_v14  ;;  %v1483_v39 = vmul.f32 %v2046_v24, %v1482_v3 }
 0x27a   : > { %1778 = vst [vmem:[%s2865_s19 + $0x78] sm:$0xff] %v1746_v9  ;;  %2049 = vrsqrt.f32 %v1327_v19  ;;  %vm1527_vm8 = vweird.f32 %v1327_v19 }
 0x27b   : > { %v1510_v21 = vsel %vm1509_vm0, %v2044_v25, %v1506_v20  ;;  %v1484_v15 = vmul.f32 0.5, %v1483_v39 }
 0x27c   : > { %v1677_v34 = vmul.f32 %v1510_v21, %v2823_v22 }
 0x27d   : > { %v1485_v37 = vsub.f32 1.5, %v1484_v15  ;;  %v1252_v48 = vpop.xlane.xlu0 %1251 }
 0x27e   : > { %v2048_v32 = vpop.eup %2047  ;;  %v1712_v13 = vmul.f32 %v2841_v0, %v1677_v34  ;;  %v1296_v40 = vmul.f32 %v1252_v48, %v2646_v31 }
 0x27f   : > { %v1486_v49 = vmul.f32 %v2046_v24, %v1485_v37  ;;  %v1512_v26 = vmul.f32 %v2048_v32, %v1326_v36  ;;  %vm1518_vm4 = vweird.f32 %v2048_v32 }
 0x280   : > { %v2050_v62 = vpop.eup %2049  ;;  %v1747_v52 = vadd.f32 %v2849_v45, %v1712_v13  ;;  %v1328_v4 = vadd.f32 1e-12, %v1296_v40  ;;  %vm1519_vm7 = vmor %vm1517_vm5, %vm1518_vm4 }
 0x281   : > { %v1490_v59 = vsel %vm1489_vm3, %v2046_v24, %v1486_v49  ;;  %v1513_v7 = vmul.f32 %v2048_v32, %v1512_v26  ;;  %v1522_v22 = vmul.f32 %v2050_v62, %v1327_v19  ;;  %vm1528_vm6 = vweird.f32 %v2050_v62 }
 0x282   : > { %1779 = vst [vmem:[%s2865_s19 + $0x80] sm:$0xff] %v1747_v52  ;;  %v1675_v55 = vmul.f32 %v1490_v59, %v2832_v18  ;;  %2051 = vrsqrt.f32 %v1328_v4  ;;  %vm1529_vm9 = vmor %vm1527_vm8, %vm1528_vm6  ;;  %vm1537_vm11 = vweird.f32 %v1328_v4 }
 0x283   : > { %v1514_v30 = vmul.f32 0.5, %v1513_v7  ;;  %v1523_v50 = vmul.f32 %v2050_v62, %v1522_v22 }
 0x284   : > { %v1710_v56 = vmul.f32 %v2841_v0, %v1675_v55 }
 0x285   : > { %v1515_v44 = vsub.f32 1.5, %v1514_v30  ;;  %v1524_v42 = vmul.f32 0.5, %v1523_v50  ;;  %v1254_v58 = vpop.xlane.xlu1 %1253 }
 0x286   : > { %v1745_v6 = vadd.f32 %v2849_v45, %v1710_v56  ;;  %v1297_v47 = vmul.f32 %v1254_v58, %v2646_v31 }
 0x287   : > { %v1516_v25 = vmul.f32 %v2048_v32, %v1515_v44  ;;  %v1525_v60 = vsub.f32 1.5, %v1524_v42 }
 0x288   : > { %v2052_v27 = vpop.eup %2051  ;;  %1777 = vst [vmem:[%s2865_s19 + $0x70] sm:$0xff] %v1745_v6  ;;  %v1329_v18 = vadd.f32 1e-12, %v1297_v47 }
 0x289   : > { %v1520_v2 = vsel %vm1519_vm7, %v2048_v32, %v1516_v25  ;;  %v1526_v43 = vmul.f32 %v2050_v62, %v1525_v60  ;;  %v1532_v61 = vmul.f32 %v2052_v27, %v1328_v4  ;;  %vm1538_vm10 = vweird.f32 %v2052_v27 }
 0x28a   : > { %v1678_v11 = vmul.f32 %v1520_v2, %v2844_v41  ;;  %2053 = vrsqrt.f32 %v1329_v18  ;;  %vm1539_vm12 = vmor %vm1537_vm11, %vm1538_vm10  ;;  %vm1547_vm14 = vweird.f32 %v1329_v18 }
 0x28b   : > { %v1530_v29 = vsel %vm1529_vm9, %v2050_v62, %v1526_v43  ;;  %v1533_v12 = vmul.f32 %v2052_v27, %v1532_v61 }
 0x28c   : > { %v1713_v54 = vmul.f32 %v2841_v0, %v1678_v11  ;;  %v1679_v24 = vmul.f32 %v1530_v29, %v2855_v16 }
 0x28d   : > { %v1534_v5 = vmul.f32 0.5, %v1533_v12  ;;  %v1256_v36 = vpop.xlane.xlu2 %1255 }
 0x28e   : > { %v1748_v63 = vadd.f32 %v2849_v45, %v1713_v54  ;;  %v1714_v14 = vmul.f32 %v2841_v0, %v1679_v24  ;;  %v1298_v3 = vmul.f32 %v1256_v36, %v2646_v31 }
 0x28f   : > { %v1535_v9 = vsub.f32 1.5, %v1534_v5 }
 0x290   : > { %v2054_v41 = vpop.eup %2053  ;;  %1780 = vst [vmem:[%s2865_s19 + $0x88] sm:$0xff] %v1748_v63  ;;  %v1749_v19 = vadd.f32 %v2849_v45, %v1714_v14  ;;  %v1330_v20 = vadd.f32 1e-12, %v1298_v3 }
 0x291   : > { %v1536_v39 = vmul.f32 %v2052_v27, %v1535_v9  ;;  %v1542_v21 = vmul.f32 %v2054_v41, %v1329_v18  ;;  %vm1548_vm13 = vweird.f32 %v2054_v41 }
 0x292   : > { %1781 = vst [vmem:[%s2865_s19 + $0x90] sm:$0xff] %v1749_v19  ;;  %2055 = vrsqrt.f32 %v1330_v20  ;;  %vm1549_vm15 = vmor %vm1547_vm14, %vm1548_vm13  ;;  %vm1557_vm1 = vweird.f32 %v1330_v20 }
 0x293   : > { %v1540_v16 = vsel %vm1539_vm12, %v2052_v27, %v1536_v39  ;;  %v1543_v15 = vmul.f32 %v2054_v41, %v1542_v21 }
 0x294   : > { %v1680_v34 = vmul.f32 %v1540_v16, %v2872_v51 }
 0x295   : > { %v1544_v37 = vmul.f32 0.5, %v1543_v15  ;;  %v1258_v48 = vpop.xlane.xlu0 %1257 }
 0x296   : > { %v1715_v32 = vmul.f32 %v2841_v0, %v1680_v34  ;;  %v1299_v13 = vmul.f32 %v1258_v48, %v2646_v31 }
 0x297   : > { %v1545_v40 = vsub.f32 1.5, %v1544_v37 }
 0x298   : > { %v2056_v49 = vpop.eup %2055  ;;  %v1750_v26 = vadd.f32 %v2849_v45, %v1715_v32  ;;  %v1331_v62 = vadd.f32 1e-12, %v1299_v13 }
 0x299   : > { %v1546_v52 = vmul.f32 %v2054_v41, %v1545_v40  ;;  %v1552_v4 = vmul.f32 %v2056_v49, %v1330_v20  ;;  %vm1558_vm0 = vweird.f32 %v2056_v49 }
 0x29a   : > { %1782 = vst [vmem:[%s2865_s19 + $0x98] sm:$0xff] %v1750_v26  ;;  %2057 = vrsqrt.f32 %v1331_v62  ;;  %vm1559_vm2 = vmor %vm1557_vm1, %vm1558_vm0  ;;  %vm1567_vm4 = vweird.f32 %v1331_v62 }
 0x29b   : > { %v1550_v51 = vsel %vm1549_vm15, %v2054_v41, %v1546_v52  ;;  %v1553_v59 = vmul.f32 %v2056_v49, %v1552_v4 }
 0x29c   : > { %v1681_v7 = vmul.f32 %v1550_v51, %v2883_v46 }
 0x29d   : > { %v1554_v22 = vmul.f32 0.5, %v1553_v59  ;;  %v1260_v55 = vpop.xlane.xlu1 %1259 }
 0x29e   : > { %v1716_v30 = vmul.f32 %v2841_v0, %v1681_v7  ;;  %v1300_v50 = vmul.f32 %v1260_v55, %v2646_v31 }
 0x29f   : > { %v1555_v56 = vsub.f32 1.5, %v1554_v22  ;;  %v3065_v22 = vld [vmem:[%s3146_s4] ss:$0 sm:$0xff] }
 0x2a0   : > { %v2058_v44 = vpop.eup %2057  ;;  %v1751_v42 = vadd.f32 %v2849_v45, %v1716_v30  ;;  %v1332_v58 = vadd.f32 1e-12, %v1300_v50 }
 0x2a1   : > { %v1556_v6 = vmul.f32 %v2056_v49, %v1555_v56  ;;  %v1562_v47 = vmul.f32 %v2058_v44, %v1331_v62  ;;  %vm1568_vm3 = vweird.f32 %v2058_v44  ;;  %v3072_v56 = vld [vmem:[%s3147_s5] ss:$0 sm:$0xff] }
 0x2a2   : > { %1783 = vst [vmem:[%s2865_s19 + $0xa0] sm:$0xff] %v1751_v42  ;;  %2059 = vrsqrt.f32 %v1332_v58  ;;  %vm1569_vm5 = vmor %vm1567_vm4, %vm1568_vm3  ;;  %vm1577_vm7 = vweird.f32 %v1332_v58 }
 0x2a3   : > { %v1560_v46 = vsel %vm1559_vm2, %v2056_v49, %v1556_v6  ;;  %v1563_v25 = vmul.f32 %v2058_v44, %v1562_v47 }
 0x2a4   : > { %v1682_v60 = vmul.f32 %v1560_v46, %v2894_v38 }
 0x2a5   : > { %v1564_v27 = vmul.f32 0.5, %v1563_v25  ;;  %v1262_v18 = vpop.xlane.xlu2 %1261 }
 0x2a6   : > { %v1717_v2 = vmul.f32 %v2841_v0, %v1682_v60  ;;  %v1301_v43 = vmul.f32 %v1262_v18, %v2646_v31 }
 0x2a7   : > { %v1565_v61 = vsub.f32 1.5, %v1564_v27 }
 0x2a8   : > { %v2060_v11 = vpop.eup %2059  ;;  %v1752_v29 = vadd.f32 %v2849_v45, %v1717_v2  ;;  %v1333_v12 = vadd.f32 1e-12, %v1301_v43 }
 0x2a9   : > { %v1566_v54 = vmul.f32 %v2058_v44, %v1565_v61  ;;  %v1572_v24 = vmul.f32 %v2060_v11, %v1332_v58  ;;  %vm1578_vm6 = vweird.f32 %v2060_v11 }
 0x2aa   : > { %1784 = vst [vmem:[%s2865_s19 + $0xa8] sm:$0xff] %v1752_v29  ;;  %2061 = vrsqrt.f32 %v1333_v12  ;;  %vm1579_vm8 = vmor %vm1577_vm7, %vm1578_vm6  ;;  %vm1587_vm10 = vweird.f32 %v1333_v12 }
 0x2ab   : > { %v1570_v38 = vsel %vm1569_vm5, %v2058_v44, %v1566_v54  ;;  %v1573_v5 = vmul.f32 %v2060_v11, %v1572_v24 }
 0x2ac   : > { %v1683_v36 = vmul.f32 %v1570_v38, %v2905_v57 }
 0x2ad   : > { %v1574_v63 = vmul.f32 0.5, %v1573_v5  ;;  %v1264_v14 = vpop.xlane.xlu0 %1263 }
 0x2ae   : > { %v1718_v3 = vmul.f32 %v2841_v0, %v1683_v36  ;;  %v1302_v9 = vmul.f32 %v1264_v14, %v2646_v31 }
 0x2af   : > { %v1575_v41 = vsub.f32 1.5, %v1574_v63 }
 0x2b0   : > { %v2062_v19 = vpop.eup %2061  ;;  %v1753_v20 = vadd.f32 %v2849_v45, %v1718_v3  ;;  %v1334_v39 = vadd.f32 1e-12, %v1302_v9 }
 0x2b1   : > { %v1576_v21 = vmul.f32 %v2060_v11, %v1575_v41  ;;  %v1582_v16 = vmul.f32 %v2062_v19, %v1333_v12  ;;  %vm1588_vm9 = vweird.f32 %v2062_v19 }
 0x2b2   : > { %1785 = vst [vmem:[%s2865_s19 + $0xb0] sm:$0xff] %v1753_v20  ;;  %2063 = vrsqrt.f32 %v1334_v39  ;;  %vm1589_vm11 = vmor %vm1587_vm10, %vm1588_vm9  ;;  %vm1597_vm13 = vweird.f32 %v1334_v39 }
 0x2b3   : > { %v1580_v57 = vsel %vm1579_vm8, %v2060_v11, %v1576_v21  ;;  %v1583_v15 = vmul.f32 %v2062_v19, %v1582_v16 }
 0x2b4   : > { %v1684_v34 = vmul.f32 %v1580_v57, %v2916_v28 }
 0x2b5   : > { %v1584_v37 = vmul.f32 0.5, %v1583_v15  ;;  %v1266_v48 = vpop.xlane.xlu1 %1265 }
 0x2b6   : > { %v1719_v32 = vmul.f32 %v2841_v0, %v1684_v34  ;;  %v1303_v13 = vmul.f32 %v1266_v48, %v2646_v31 }
 0x2b7   : > { %v1585_v40 = vsub.f32 1.5, %v1584_v37 }
 0x2b8   : > { %v2064_v49 = vpop.eup %2063  ;;  %v1754_v26 = vadd.f32 %v2849_v45, %v1719_v32  ;;  %v1335_v62 = vadd.f32 1e-12, %v1303_v13 }
 0x2b9   : > { %v1586_v52 = vmul.f32 %v2062_v19, %v1585_v40  ;;  %v1592_v4 = vmul.f32 %v2064_v49, %v1334_v39  ;;  %vm1598_vm12 = vweird.f32 %v2064_v49 }
 0x2ba   : > { %1786 = vst [vmem:[%s2865_s19 + $0xb8] sm:$0xff] %v1754_v26  ;;  %2065 = vrsqrt.f32 %v1335_v62  ;;  %vm1599_vm14 = vmor %vm1597_vm13, %vm1598_vm12  ;;  %vm1607_vm0 = vweird.f32 %v1335_v62 }
 0x2bb   : > { %v1590_v51 = vsel %vm1589_vm11, %v2062_v19, %v1586_v52  ;;  %v1593_v28 = vmul.f32 %v2064_v49, %v1592_v4 }
 0x2bc   : > { %v1685_v59 = vmul.f32 %v1590_v51, %v2927_v1 }
 0x2bd   : > { %v1594_v0 = vmul.f32 0.5, %v1593_v28  ;;  %v1268_v7 = vpop.xlane.xlu2 %1267 }
 0x2be   : > { %v1720_v45 = vmul.f32 %v3065_v22, %v1685_v59  ;;  %v1304_v55 = vmul.f32 %v1268_v7, %v2646_v31 }
 0x2bf   : > { %v1595_v30 = vsub.f32 1.5, %v1594_v0 }
 0x2c0   : > { %v2066_v50 = vpop.eup %2065  ;;  %v1755_v1 = vadd.f32 %v3072_v56, %v1720_v45  ;;  %v1336_v44 = vadd.f32 1e-12, %v1304_v55 }
 0x2c1   : > { %v1596_v42 = vmul.f32 %v2064_v49, %v1595_v30  ;;  %v1602_v58 = vmul.f32 %v2066_v50, %v1335_v62  ;;  %vm1608_vm15 = vweird.f32 %v2066_v50 }
 0x2c2   : > { %1787 = vst [vmem:[%s2865_s19 + $0xc0] sm:$0xff] %v1755_v1  ;;  %2067 = vrsqrt.f32 %v1336_v44  ;;  %vm1609_vm1 = vmor %vm1607_vm0, %vm1608_vm15  ;;  %vm1617_vm3 = vweird.f32 %v1336_v44 }
 0x2c3   : > { %v1600_v6 = vsel %vm1599_vm14, %v2064_v49, %v1596_v42  ;;  %v1603_v47 = vmul.f32 %v2066_v50, %v1602_v58 }
 0x2c4   : > { %v1686_v46 = vmul.f32 %v1600_v6, %v2938_v33 }
 0x2c5   : > { %v1604_v25 = vmul.f32 0.5, %v1603_v47  ;;  %v1270_v60 = vpop.xlane.xlu0 %1269 }
 0x2c6   : > { %v1721_v27 = vmul.f32 %v3065_v22, %v1686_v46  ;;  %v1305_v18 = vmul.f32 %v1270_v60, %v2646_v31 }
 0x2c7   : > { %v1605_v2 = vsub.f32 1.5, %v1604_v25 }
 0x2c8   : > { %v2068_v43 = vpop.eup %2067  ;;  %v1756_v61 = vadd.f32 %v3072_v56, %v1721_v27  ;;  %v1337_v11 = vadd.f32 1e-12, %v1305_v18 }
 0x2c9   : > { %v1606_v29 = vmul.f32 %v2066_v50, %v1605_v2  ;;  %v1612_v12 = vmul.f32 %v2068_v43, %v1336_v44  ;;  %vm1618_vm2 = vweird.f32 %v2068_v43 }
 0x2ca   : > { %1788 = vst [vmem:[%s2865_s19 + $0xc8] sm:$0xff] %v1756_v61  ;;  %2069 = vrsqrt.f32 %v1337_v11  ;;  %vm1619_vm4 = vmor %vm1617_vm3, %vm1618_vm2  ;;  %vm1627_vm6 = vweird.f32 %v1337_v11 }
 0x2cb   : > { %v1610_v33 = vsel %vm1609_vm1, %v2066_v50, %v1606_v29  ;;  %v1613_v54 = vmul.f32 %v2068_v43, %v1612_v12 }
 0x2cc   : > { %v1687_v24 = vmul.f32 %v1610_v33, %v2949_v53 }
 0x2cd   : > { %v1614_v38 = vmul.f32 0.5, %v1613_v54  ;;  %v1272_v5 = vpop.xlane.xlu1 %1271 }
 0x2ce   : > { %v1722_v36 = vmul.f32 %v3065_v22, %v1687_v24  ;;  %v1306_v63 = vmul.f32 %v1272_v5, %v2646_v31 }
 0x2cf   : > { %v1615_v14 = vsub.f32 1.5, %v1614_v38 }
 0x2d0   : > { %v2070_v3 = vpop.eup %2069  ;;  %v1757_v9 = vadd.f32 %v3072_v56, %v1722_v36  ;;  %v1338_v41 = vadd.f32 1e-12, %v1306_v63 }
 0x2d1   : > { %v1616_v19 = vmul.f32 %v2068_v43, %v1615_v14  ;;  %v1622_v20 = vmul.f32 %v2070_v3, %v1337_v11  ;;  %vm1628_vm5 = vweird.f32 %v2070_v3 }
 0x2d2   : > { %1789 = vst [vmem:[%s2865_s19 + $0xd0] sm:$0xff] %v1757_v9  ;;  %2071 = vrsqrt.f32 %v1338_v41  ;;  %vm1629_vm7 = vmor %vm1627_vm6, %vm1628_vm5  ;;  %vm1637_vm9 = vweird.f32 %v1338_v41 }
 0x2d3   : > { %v1620_v53 = vsel %vm1619_vm4, %v2068_v43, %v1616_v19  ;;  %v1623_v39 = vmul.f32 %v2070_v3, %v1622_v20 }
 0x2d4   : > { %v1688_v21 = vmul.f32 %v1620_v53, %v2960_v17 }
 0x2d5   : > { %v1624_v16 = vmul.f32 0.5, %v1623_v39  ;;  %v1274_v57 = vpop.xlane.xlu2 %1273 }
 0x2d6   : > { %v1723_v15 = vmul.f32 %v3065_v22, %v1688_v21  ;;  %v1307_v34 = vmul.f32 %v1274_v57, %v2646_v31 }
 0x2d7   : > { %v1625_v37 = vsub.f32 1.5, %v1624_v16 }
 0x2d8   : > { %v2072_v48 = vpop.eup %2071  ;;  %v1758_v32 = vadd.f32 %v3072_v56, %v1723_v15  ;;  %v1339_v13 = vadd.f32 1e-12, %v1307_v34 }
 0x2d9   : > { %v1626_v40 = vmul.f32 %v2070_v3, %v1625_v37  ;;  %v1632_v49 = vmul.f32 %v2072_v48, %v1338_v41  ;;  %vm1638_vm8 = vweird.f32 %v2072_v48 }
 0x2da   : > { %1790 = vst [vmem:[%s2865_s19 + $0xd8] sm:$0xff] %v1758_v32  ;;  %2073 = vrsqrt.f32 %v1339_v13  ;;  %vm1639_vm10 = vmor %vm1637_vm9, %vm1638_vm8  ;;  %vm1647_vm12 = vweird.f32 %v1339_v13 }
 0x2db   : > { %v1630_v17 = vsel %vm1629_vm7, %v2070_v3, %v1626_v40  ;;  %v1633_v26 = vmul.f32 %v2072_v48, %v1632_v49 }
 0x2dc   : > { %v1689_v62 = vmul.f32 %v1630_v17, %v2971_v35 }
 0x2dd   : > { %v1634_v52 = vmul.f32 0.5, %v1633_v26  ;;  %v1276_v4 = vpop.xlane.xlu0 %1275 }
 0x2de   : > { %v1724_v51 = vmul.f32 %v3065_v22, %v1689_v62  ;;  %v1308_v28 = vmul.f32 %v1276_v4, %v2646_v31 }
 0x2df   : > { %v1635_v59 = vsub.f32 1.5, %v1634_v52 }
 0x2e0   : > { %v2074_v0 = vpop.eup %2073  ;;  %v1759_v7 = vadd.f32 %v3072_v56, %v1724_v51  ;;  %v1340_v45 = vadd.f32 1e-12, %v1308_v28 }
 0x2e1   : > { %v1636_v55 = vmul.f32 %v2072_v48, %v1635_v59  ;;  %v1642_v30 = vmul.f32 %v2074_v0, %v1339_v13  ;;  %vm1648_vm11 = vweird.f32 %v2074_v0 }
 0x2e2   : > { %1791 = vst [vmem:[%s2865_s19 + $0xe0] sm:$0xff] %v1759_v7  ;;  %2075 = vrsqrt.f32 %v1340_v45  ;;  %vm1649_vm13 = vmor %vm1647_vm12, %vm1648_vm11  ;;  %vm1657_vm15 = vweird.f32 %v1340_v45 }
 0x2e3   : > { %v1640_v35 = vsel %vm1639_vm10, %v2072_v48, %v1636_v55  ;;  %v1643_v50 = vmul.f32 %v2074_v0, %v1642_v30 }
 0x2e4   : > { %v1690_v1 = vmul.f32 %v1640_v35, %v2982_v10 }
 0x2e5   : > { %v1644_v44 = vmul.f32 0.5, %v1643_v50 }
 0x2e6   : > { %v1725_v31 = vmul.f32 %v3065_v22, %v1690_v1 }
 0x2e7   : > { %v1645_v42 = vsub.f32 1.5, %v1644_v44 }
 0x2e8   : > { %v2076_v58 = vpop.eup %2075  ;;  %v1760_v6 = vadd.f32 %v3072_v56, %v1725_v31 }
 0x2e9   : > { %v1646_v47 = vmul.f32 %v2074_v0, %v1645_v42  ;;  %v1652_v46 = vmul.f32 %v2076_v58, %v1340_v45  ;;  %vm1658_vm14 = vweird.f32 %v2076_v58 }
 0x2ea   : > { %1792 = vst [vmem:[%s2865_s19 + $0xe8] sm:$0xff] %v1760_v6  ;;  %vm1659_vm0 = vmor %vm1657_vm15, %vm1658_vm14 }
 0x2eb   : > { %v1650_v25 = vsel %vm1649_vm13, %v2074_v0, %v1646_v47  ;;  %v1653_v60 = vmul.f32 %v2076_v58, %v1652_v46 }
 0x2ec   : > { %v1691_v10 = vmul.f32 %v1650_v25, %v2992_v23 }
 0x2ed   : > { %v1654_v27 = vmul.f32 0.5, %v1653_v60 }
 0x2ee   : > { %v1726_v18 = vmul.f32 %v3065_v22, %v1691_v10 }
 0x2ef   : > { %v1655_v2 = vsub.f32 1.5, %v1654_v27 }
 0x2f0   : > { %v1761_v43 = vadd.f32 %v3072_v56, %v1726_v18 }
 0x2f1   : > { %v1656_v61 = vmul.f32 %v2076_v58, %v1655_v2 }
 0x2f2   : > { %1793 = vst [vmem:[%s2865_s19 + $0xf0] sm:$0xff] %v1761_v43 }
 0x2f3   : > { %v1660_v23 = vsel %vm1659_vm0, %v2076_v58, %v1656_v61 }
 0x2f4   : > { %v1692_v11 = vmul.f32 %v1660_v23, %v3003_v8 }
 0x2f6   : > { %v1727_v29 = vmul.f32 %v3065_v22, %v1692_v11 }
 0x2f8   : > { %v1762_v12 = vadd.f32 %v3072_v56, %v1727_v29 }
 0x2fa   : > { %1794 = vst [vmem:[%s2865_s19 + $0xf8] sm:$0xff] %v1762_v12 }
 0x2fb   : > { %2197 = shalt.err (!%p2194_p5)
}
 0x2fc   : > { %s2252_s20 = smov 128   ;;  %s2253_s19 = smov 8  }
 0x2fd   : > { %1947 = dma.vmem_to_hbm [thread:$0]  (%p2374_p11), %s1809_s15, 4096, %s1811_s11, %s1796_s17, %s2252_s20, %s2252_s20, %s2253_s19  }
 0x2fe PF: > { %s1825_s27 = sand.u32 1, %s2232_s21   ;;  %p3161_p7 = scmp.ge.s32.totalorder %s2244_s24, 2 }
 0x2ff   : > { %s1826_s29 = scalar_lea.sflag [#allocation4], %s1825_s27 }
 0x300   : > { %p1961_p9 = pnand %p3161_p7, %p2378_p12 }
 0x302   : > { %p1962_p13 = pneg %p1961_p9 }
 0x304   : > { %2227 = dma.done.wait (%p1962_p13), %s1826_s29, 4096  }
 0x305   : > { %2229 = vsyncadd (%p1962_p13), %s1826_s29, 4294963200  ;;  %s3162_s8 = sld [smem:[#allocation13_spill]]  ;;  %p20_p0 = scmp.ge.s32.totalorder %s2310_s25, 4  }
 0x306   : > { %s3163_s23 = sld [smem:[#allocation14_spill]]  ;;  %s3164_s21 = smov %s2236_s22 }
 0x307   : > { %s3166_s24 = smov %s2310_s25  ;;  %22 = sbr.rel (!%p20_p0) target bundleno = 9 (0x9), region = 104 }
 0x30b   : > { %s3165_s22 = smov %s3162_s8 }
 0x30c   :  { %1832 = vsyncpa [#allocation3], 1 }
 0x30d   :  { %1834 = vsyncpa [#allocation3 + $0x1], 1 }
 0x30e   :  { %1835 = vsyncpa [#allocation6], 1 }
 0x30f   :  { %1836 = vsyncpa [#allocation4], 1 }
 0x310   :  { %1838 = vsyncpa [#allocation4 + $0x1], 1 }

</bundles_post_ra>
